<compile_context>
chip_gen: v7x
topology: tpu7x:2x2x1
jax: 0.10.0
libtpu: 0.0.40
codegen_flags: <defaults>
</compile_context>

<pallas_src>
import jax
import jax.numpy as jnp
from jax import lax
from jax.experimental import pallas as pl
from jax.experimental.pallas import tpu as pltpu


def _round_up(x, m):
    return ((x + m - 1) // m) * m


def _choose_ts(S, max_ts=32):
    """Largest divisor of S that is <= max_ts (time-tile length)."""
    for ts in range(min(S, max_ts), 0, -1):
        if S % ts == 0:
            return ts
    return 1


# ----------------------------- Pallas kernel --------------------------------
def _bigru_kernel(gi_ref, whh_ref, bhn_ref, out_ref, hlast_ref, h_ref):
    """One grid step == (direction d, time tile t).

    gi_ref:    (TS, Bp, 3*Hp) bf16  precomputed x@W_ih + b_ih (+ folded b_hh_{r,z});
                                    gate g occupies lanes [g*Hp, g*Hp+H)
    whh_ref:   (Hp, 3*Hp) f32       hidden->gates weights (padded, gate-aligned)
    bhn_ref:   (1, Hp) f32          b_hh for the n gate (stays inside r*(...))
    out_ref:   (TS, Bp, Hp) f32     per-timestep hidden states for this tile
                                    (lane block d of the shared output)
    hlast_ref: (Bp, Hp) f32         final hidden state (written at last tile)
    h_ref:     (Bp, Hp) f32 scratch carried hidden state across time tiles
    """
    d = pl.program_id(0)
    t = pl.program_id(1)
    nt = pl.num_programs(1)
    ts, bp, hp = out_ref.shape

    @pl.when(t == 0)
    def _():
        h_ref[...] = jnp.zeros_like(h_ref)

    # Hoisted: JAX does not CSE broadcast_in_dim, so do it once per tile.
    bhn = jnp.broadcast_to(bhn_ref[...], (bp, hp))

    def step(i, h):
        # Backward direction (d == 1) walks time in reverse within the tile;
        # the tile-level reversal is already baked into the index_map.
        idx = i + d * (ts - 1 - 2 * i)
        gi = gi_ref[idx].astype(jnp.float32)                      # (Bp, 3Hp)
        gh = jnp.dot(h, whh_ref[...],
                     preferred_element_type=jnp.float32)          # (Bp, 3Hp)
        # Gate slices at 128-lane-aligned offsets -> pure VPU/EUP work.
        r = jax.nn.sigmoid(gi[:, 0:hp] + gh[:, 0:hp])
        z = jax.nn.sigmoid(gi[:, hp:2 * hp] + gh[:, hp:2 * hp])
        n = jnp.tanh(gi[:, 2 * hp:3 * hp] + r * (gh[:, 2 * hp:3 * hp] + bhn))
        h_new = (1.0 - z) * n + z * h
        out_ref[idx] = h_new
        return h_new

    h = lax.fori_loop(0, ts, step, h_ref[...], unroll=True)
    h_ref[...] = h

    @pl.when(t == nt - 1)
    def _():
        hlast_ref[...] = h


def _bigru_pallas(GI, WHH, BHN, *, TS):
    """GI: (2, S, Bp, 3Hp) bf16, WHH: (2, Hp, 3Hp) f32, BHN: (2, 1, Hp) f32."""
    _, S, Bp, threeHp = GI.shape
    Hp = threeHp // 3
    NT = S // TS

    def rev_t(d, t):
        # forward: t ; backward: NT-1-t  (time reversal via address arithmetic)
        return t + d * (NT - 1 - 2 * t)

    out_shape = (
        # shared per-step hidden output: direction d owns lanes [d*Hp,(d+1)*Hp)
        jax.ShapeDtypeStruct((S, Bp, 2 * Hp), jnp.float32),
        jax.ShapeDtypeStruct((2, Bp, Hp), jnp.float32),      # final hidden
    )
    grid_spec = pltpu.PrefetchScalarGridSpec(
        num_scalar_prefetch=0,
        grid=(2, NT),  # (direction, time tile); time runs inside the kernel
        in_specs=[
            pl.BlockSpec((None, TS, Bp, 3 * Hp),
                         lambda d, t: (d, rev_t(d, t), 0, 0)),
            pl.BlockSpec((None, Hp, 3 * Hp), lambda d, t: (d, 0, 0)),
            pl.BlockSpec((None, 1, Hp), lambda d, t: (d, 0, 0)),
        ],
        out_specs=[
            pl.BlockSpec((TS, Bp, Hp), lambda d, t: (rev_t(d, t), 0, d)),
            pl.BlockSpec((None, Bp, Hp), lambda d, t: (d, 0, 0)),
        ],
        scratch_shapes=[pltpu.VMEM((Bp, Hp), jnp.float32)],   # carried hidden
    )

    # Explicit scoped-VMEM budget (double-buffered blocks + weights + scratch).
    gi_blk = TS * Bp * 3 * Hp * GI.dtype.itemsize
    out_blk = TS * Bp * Hp * 4
    whh_blk = Hp * 3 * Hp * 4
    fixed = 8 * 128 * 4 + 2 * Bp * Hp * 4          # bhn (padded) + hlast + h scratch
    est = 2 * (gi_blk + out_blk + whh_blk) + fixed
    vmem_limit = int(min(100 * 2 ** 20, max(32 * 2 ** 20, 3 * est)))

    return pl.pallas_call(
        _bigru_kernel,
        out_shape=out_shape,
        grid_spec=grid_spec,
        compiler_params=pltpu.CompilerParams(
            dimension_semantics=("parallel", "arbitrary"),
            vmem_limit_bytes=vmem_limit),
    )(GI, WHH, BHN)


# ------------------------------ Encoder glue --------------------------------
def init_encoder_params(key, input_dim, emb_dim, hid_dim):
    keys = jax.random.split(key, 9)
    s = 1.0 / jnp.sqrt(hid_dim)

    def u(k, shape):
        return jax.random.uniform(k, shape, jnp.float32, -s, s)

    return {
        "embedding": jax.random.normal(keys[0], (input_dim, emb_dim), jnp.float32),
        # forward direction (stored transposed: (in, 3H))
        "w_ih_f": u(keys[1], (emb_dim, 3 * hid_dim)),
        "w_hh_f": u(keys[2], (hid_dim, 3 * hid_dim)),
        "b_ih_f": u(keys[3], (1, 3 * hid_dim)),
        "b_hh_f": u(keys[4], (1, 3 * hid_dim)),
        # backward direction
        "w_ih_b": u(keys[5], (emb_dim, 3 * hid_dim)),
        "w_hh_b": u(keys[6], (hid_dim, 3 * hid_dim)),
        "b_ih_b": u(keys[7], (1, 3 * hid_dim)),
        "b_hh_b": u(keys[8], (1, 3 * hid_dim)),
    }


def encoder_forward(params, tokens, *, dropout_rate=0.0, train=False, rng=None):
    """tokens: int32 (B, S). Returns (output (B, S, 2H), hidden (2, B, H))."""
    emb = jnp.take(params["embedding"], tokens, axis=0)          # (B, S, E)

    # Dropout: identity in eval mode (PyTorch nn.Dropout.eval()); inverted
    # dropout with an explicit key in train mode.
    if train and dropout_rate > 0.0:
        keep = 1.0 - dropout_rate
        mask = jax.random.bernoulli(rng, keep, emb.shape)
        emb = jnp.where(mask, emb / keep, 0.0)

    emb = emb.astype(jnp.float32)
    B, S, E = emb.shape
    H = params["w_hh_f"].shape[0]
    Bp = max(8, _round_up(B, 8))        # pad batch to full sublanes
    Hp = max(128, _round_up(H, 128))    # pad each gate to full lane tiles
    TS = _choose_ts(S)                  # time-tile length (divides S)

    # Pad the batch once; padded rows stay zero (each batch row is independent
    # in a GRU, so padded rows never contaminate real ones).
    emb_p = jnp.zeros((Bp, S, E), jnp.float32).at[:B].set(emb)

    # ---- fold the padding into the (tiny) weights / biases --------------------
    def pad_w_ih(w):                     # (E, 3H) -> (E, 3Hp), gate-lane aligned
        out = jnp.zeros((E, 3 * Hp), jnp.float32)
        for g in range(3):
            out = out.at[:, g * Hp:g * Hp + H].set(w[:, g * H:(g + 1) * H])
        return out

    def pad_bias_fold(b_ih, b_hh):       # b_ih (all gates) + b_hh (r,z only)
        out = jnp.zeros((1, 3 * Hp), jnp.float32)
        for g in range(3):
            out = out.at[:, g * Hp:g * Hp + H].set(b_ih[:, g * H:(g + 1) * H])
        for g in range(2):               # b_hh_n must stay inside r*(...) in-kernel
            out = out.at[:, g * Hp:g * Hp + H].add(b_hh[:, g * H:(g + 1) * H])
        return out

    def pad_whh(w):                      # (H, 3H) -> (Hp, 3Hp)
        out = jnp.zeros((Hp, 3 * Hp), jnp.float32)
        for g in range(3):
            out = out.at[:H, g * Hp:g * Hp + H].set(w[:, g * H:(g + 1) * H])
        return out

    def pad_bhn(b_hh):
        return jnp.zeros((1, Hp), jnp.float32).at[:, :H].set(b_hh[:, 2 * H:3 * H])

    WIH = jnp.stack([pad_w_ih(params["w_ih_f"]), pad_w_ih(params["w_ih_b"])])   # (2,E,3Hp)
    BF = jnp.stack([pad_bias_fold(params["b_ih_f"], params["b_hh_f"]),
                    pad_bias_fold(params["b_ih_b"], params["b_hh_b"])])         # (2,1,3Hp)
    WHH = jnp.stack([pad_whh(params["w_hh_f"]), pad_whh(params["w_hh_b"])])     # (2,Hp,3Hp)
    BHN = jnp.stack([pad_bhn(params["b_hh_f"]), pad_bhn(params["b_hh_b"])])     # (2,1,Hp)

    # ---- hoisted, time-independent input projection (one big XLA matmul) ------
    # Directly produces the padded, gate-lane-aligned (2, S, Bp, 3Hp) slab.
    GI = jnp.einsum("bse,deg->dsbg", emb_p, WIH) + BF[:, None, :, :]
    GI = GI.astype(jnp.bfloat16)   # halves HBM/VMEM traffic; upcast in-kernel

    out_pad, hlast_pad = _bigru_pallas(GI, WHH, BHN, TS=TS)

    # out_pad: (S, Bp, 2Hp) — forward in lanes [0:H], backward in [Hp:Hp+H]
    out_f = out_pad[:, :B, 0:H]
    out_b = out_pad[:, :B, Hp:Hp + H]
    output = jnp.concatenate([out_f, out_b], axis=-1)    # (S, B, 2H)
    output = jnp.transpose(output, (1, 0, 2))            # (B, S, 2H), batch_first
    hidden = hlast_pad[:, :B, :H]                        # (2, B, H)
    return output, hidden


# --------------------------- pure-JAX reference ------------------------------
def _gru_ref_dir(x_tm, w_ih, w_hh, b_ih, b_hh, reverse):
    S, B, E = x_tm.shape
    H = w_hh.shape[0]
    xs = x_tm[::-1] if reverse else x_tm

    def step(h, x_t):
        gi = x_t @ w_ih + b_ih
        gh = h @ w_hh + b_hh
        i_r, i_z, i_n = jnp.split(gi, 3, axis=-1)
        h_r, h_z, h_n = jnp.split(gh, 3, axis=-1)
        r = jax.nn.sigmoid(i_r + h_r)
        z = jax.nn.sigmoid(i_z + h_z)
        n = jnp.tanh(i_n + r * h_n)
        h_new = (1.0 - z) * n + z * h
        return h_new, h_new

    h_last, ys = lax.scan(step, jnp.zeros((B, H), jnp.float32), xs)
    if reverse:
        ys = ys[::-1]
    return ys, h_last


def encoder_forward_ref(params, tokens):
    emb = jnp.take(params["embedding"], tokens, axis=0)
    x_tm = jnp.transpose(emb, (1, 0, 2)).astype(jnp.float32)
    out_f, h_f = _gru_ref_dir(x_tm, params["w_ih_f"], params["w_hh_f"],
                              params["b_ih_f"], params["b_hh_f"], False)
    out_b, h_b = _gru_ref_dir(x_tm, params["w_ih_b"], params["w_hh_b"],
                              params["b_ih_b"], params["b_hh_b"], True)
    output = jnp.transpose(jnp.concatenate([out_f, out_b], axis=-1), (1, 0, 2))
    hidden = jnp.stack([h_f, h_b], axis=0)
    return output, hidden


# ----------------------------------- main ------------------------------------
if __name__ == "__main__":
    INPUT_DIM, EMB_DIM, HID_DIM, DROPOUT = 50, 16, 32, 0.1
    B, S = 2, 8

    key = jax.random.PRNGKey(0)
    k_tok, k_par = jax.random.split(key)

    params = init_encoder_params(k_par, INPUT_DIM, EMB_DIM, HID_DIM)
    tokens = jax.random.randint(k_tok, (B, S), 0, INPUT_DIM, dtype=jnp.int32)

    # Eval-mode forward (dropout is identity), matching model.eval() semantics.
    output, hidden = encoder_forward(params, tokens, dropout_rate=DROPOUT, train=False)
    output = jax.block_until_ready(output)
    hidden = jax.block_until_ready(hidden)

    assert output.shape == (B, S, 2 * HID_DIM)
    assert hidden.shape == (2, B, HID_DIM)

    # bf16 GI -> loosened tolerances (gate math / matmul stay f32 in-kernel).
    out_ref, hid_ref = encoder_forward_ref(params, tokens)
    assert jnp.allclose(output, out_ref, rtol=2e-2, atol=2e-2), "output mismatch"
    assert jnp.allclose(hidden, hid_ref, rtol=2e-2, atol=2e-2), "hidden mismatch"

    print("KERNEL_OK")
</pallas_src>

<mosaic_0001>
module attributes {stable_mosaic.version = 11 : i64} {
  func.func @_bigru_kernel(%arg0: i32, %arg1: i32, %arg2: memref<1x8x8x384xbf16, #tpu.memory_space<vmem>>, %arg3: memref<1x128x384xf32, #tpu.memory_space<vmem>>, %arg4: memref<1x1x128xf32, #tpu.memory_space<vmem>>, %arg5: memref<8x8x128xf32, #tpu.memory_space<vmem>>, %arg6: memref<1x8x128xf32, #tpu.memory_space<vmem>>, %arg7: memref<8x128xf32, #tpu.memory_space<vmem>>) attributes {dimension_semantics = [#tpu.dimension_semantics<parallel>, #tpu.dimension_semantics<arbitrary>], iteration_bounds = array<i64: 2, 1>, scalar_prefetch = 0 : i64, scratch_operands = 1 : i64, tpu.core_type = #tpu.core_type<tc>, window_params = [{transform_indices = @transform_0, window_bounds = array<i64: 1, 8, 8, 384>}, {transform_indices = @transform_1, window_bounds = array<i64: 1, 128, 384>}, {transform_indices = @transform_2, window_bounds = array<i64: 1, 1, 128>}, {transform_indices = @transform_3, window_bounds = array<i64: 8, 8, 128>}, {transform_indices = @transform_4, window_bounds = array<i64: 1, 8, 128>}]} {
    %c0_i32 = arith.constant 0 : i32
    %0 = arith.cmpi eq, %arg1, %c0_i32 : i32
    %1 = arith.extui %0 : i1 to i32
    %c0_i32_0 = arith.constant 0 : i32
    %2 = arith.cmpi ne, %1, %c0_i32_0 : i32
    scf.if %2 {
      %cst_121 = arith.constant 0.000000e+00 : f32
      %348 = vector.broadcast %cst_121 : f32 to vector<8x128xf32>
      %c0_122 = arith.constant 0 : index
      %c0_123 = arith.constant 0 : index
      %349 = vector.load %arg7[%c0_122, %c0_123] : memref<8x128xf32, #tpu.memory_space<vmem>>, vector<8x128xf32>
      tpu.vector_store %arg7[%c0_122, %c0_123], %348 {strides = array<i32>} : memref<8x128xf32, #tpu.memory_space<vmem>>, vector<8x128xf32>,
    } else {
    }
    %c0 = arith.constant 0 : index
    %c0_1 = arith.constant 0 : index
    %c0_2 = arith.constant 0 : index
    %3 = vector.load %arg4[%c0, %c0_1, %c0_2] : memref<1x1x128xf32, #tpu.memory_space<vmem>>, vector<1x1x128xf32>
    %4 = vector.shape_cast %3 : vector<1x1x128xf32> to vector<1x128xf32>
    %5 = vector.shape_cast %4 : vector<1x128xf32> to vector<1x128xf32>
    %6 = vector.broadcast %5 : vector<1x128xf32> to vector<8x128xf32>
    %c0_3 = arith.constant 0 : index
    %c0_4 = arith.constant 0 : index
    %7 = vector.load %arg7[%c0_3, %c0_4] : memref<8x128xf32, #tpu.memory_space<vmem>>, vector<8x128xf32>
    %c0_i32_5 = arith.constant 0 : i32
    %c2_i32 = arith.constant 2 : i32
    %8 = arith.muli %c2_i32, %c0_i32_5 : i32
    %c7_i32 = arith.constant 7 : i32
    %9 = arith.subi %c7_i32, %8 : i32
    %10 = arith.muli %arg0, %9 : i32
    %11 = arith.addi %c0_i32_5, %10 : i32
    %c0_6 = arith.constant 0 : index
    %12 = arith.index_cast %11 : i32 to index
    %c0_7 = arith.constant 0 : index
    %c0_8 = arith.constant 0 : index
    %13 = vector.load %arg2[%c0_6, %12, %c0_7, %c0_8] : memref<1x8x8x384xbf16, #tpu.memory_space<vmem>>, vector<1x1x8x384xbf16>
    %14 = vector.shape_cast %13 : vector<1x1x8x384xbf16> to vector<8x384xbf16>
    %15 = arith.extf %14 : vector<8x384xbf16> to vector<8x384xf32>
    %c0_9 = arith.constant 0 : index
    %c0_10 = arith.constant 0 : index
    %c0_11 = arith.constant 0 : index
    %16 = vector.load %arg3[%c0_9, %c0_10, %c0_11] : memref<1x128x384xf32, #tpu.memory_space<vmem>>, vector<1x128x384xf32>
    %17 = vector.shape_cast %16 : vector<1x128x384xf32> to vector<128x384xf32>
    %cst = arith.constant dense<0.000000e+00> : vector<8x384xf32>
    %18 = tpu.matmul %7, %17, %cst {dimension_numbers = #tpu.dot_dimension_numbers<[1], [0], [0], [1], [0, 0, 1, 1], [], []>} : vector<8x128xf32>, vector<128x384xf32>, vector<8x384xf32> -> vector<8x384xf32>
    %19 = vector.extract_strided_slice %15 {offsets = [0, 0], sizes = [8, 128], strides = [1, 1]} : vector<8x384xf32> to vector<8x128xf32>
    %20 = vector.extract_strided_slice %18 {offsets = [0, 0], sizes = [8, 128], strides = [1, 1]} : vector<8x384xf32> to vector<8x128xf32>
    %21 = arith.addf %19, %20 : vector<8x128xf32>
    %22 = arith.negf %21 : vector<8x128xf32>
    %23 = math.exp %22 : vector<8x128xf32>
    %cst_12 = arith.constant 1.000000e+00 : f32
    %24 = vector.broadcast %cst_12 : f32 to vector<8x128xf32>
    %25 = arith.addf %24, %23 : vector<8x128xf32>
    %26 = arith.divf %24, %25 : vector<8x128xf32>
    %27 = vector.extract_strided_slice %15 {offsets = [0, 128], sizes = [8, 128], strides = [1, 1]} : vector<8x384xf32> to vector<8x128xf32>
    %28 = vector.extract_strided_slice %18 {offsets = [0, 128], sizes = [8, 128], strides = [1, 1]} : vector<8x384xf32> to vector<8x128xf32>
    %29 = arith.addf %27, %28 : vector<8x128xf32>
    %30 = arith.negf %29 : vector<8x128xf32>
    %31 = math.exp %30 : vector<8x128xf32>
    %cst_13 = arith.constant 1.000000e+00 : f32
    %32 = vector.broadcast %cst_13 : f32 to vector<8x128xf32>
    %33 = arith.addf %32, %31 : vector<8x128xf32>
    %34 = arith.divf %32, %33 : vector<8x128xf32>
    %35 = vector.extract_strided_slice %15 {offsets = [0, 256], sizes = [8, 128], strides = [1, 1]} : vector<8x384xf32> to vector<8x128xf32>
    %36 = vector.extract_strided_slice %18 {offsets = [0, 256], sizes = [8, 128], strides = [1, 1]} : vector<8x384xf32> to vector<8x128xf32>
    %37 = arith.addf %36, %6 : vector<8x128xf32>
    %38 = arith.mulf %26, %37 : vector<8x128xf32>
    %39 = arith.addf %35, %38 : vector<8x128xf32>
    %40 = math.tanh %39 : vector<8x128xf32>
    %cst_14 = arith.constant 1.000000e+00 : f32
    %41 = vector.broadcast %cst_14 : f32 to vector<8x128xf32>
    %42 = arith.subf %41, %34 : vector<8x128xf32>
    %43 = arith.mulf %42, %40 : vector<8x128xf32>
    %44 = arith.mulf %34, %7 : vector<8x128xf32>
    %45 = arith.addf %43, %44 : vector<8x128xf32>
    %46 = arith.index_cast %11 : i32 to index
    %c0_15 = arith.constant 0 : index
    %c0_16 = arith.constant 0 : index
    %47 = vector.load %arg5[%46, %c0_15, %c0_16] : memref<8x8x128xf32, #tpu.memory_space<vmem>>, vector<1x8x128xf32>
    %48 = vector.shape_cast %47 : vector<1x8x128xf32> to vector<8x128xf32>
    %49 = vector.shape_cast %45 : vector<8x128xf32> to vector<1x8x128xf32>
    tpu.vector_store %arg5[%46, %c0_15, %c0_16], %49 {strides = array<i32>} : memref<8x8x128xf32, #tpu.memory_space<vmem>>, vector<1x8x128xf32>,
    %c1_i32 = arith.constant 1 : i32
    %c2_i32_17 = arith.constant 2 : i32
    %50 = arith.muli %c2_i32_17, %c1_i32 : i32
    %c7_i32_18 = arith.constant 7 : i32
    %51 = arith.subi %c7_i32_18, %50 : i32
    %52 = arith.muli %arg0, %51 : i32
    %53 = arith.addi %c1_i32, %52 : i32
    %c0_19 = arith.constant 0 : index
    %54 = arith.index_cast %53 : i32 to index
    %c0_20 = arith.constant 0 : index
    %c0_21 = arith.constant 0 : index
    %55 = vector.load %arg2[%c0_19, %54, %c0_20, %c0_21] : memref<1x8x8x384xbf16, #tpu.memory_space<vmem>>, vector<1x1x8x384xbf16>
    %56 = vector.shape_cast %55 : vector<1x1x8x384xbf16> to vector<8x384xbf16>
    %57 = arith.extf %56 : vector<8x384xbf16> to vector<8x384xf32>
    %c0_22 = arith.constant 0 : index
    %c0_23 = arith.constant 0 : index
    %c0_24 = arith.constant 0 : index
    %58 = vector.load %arg3[%c0_22, %c0_23, %c0_24] : memref<1x128x384xf32, #tpu.memory_space<vmem>>, vector<1x128x384xf32>
    %59 = vector.shape_cast %58 : vector<1x128x384xf32> to vector<128x384xf32>
    %cst_25 = arith.constant dense<0.000000e+00> : vector<8x384xf32>
    %60 = tpu.matmul %45, %59, %cst_25 {dimension_numbers = #tpu.dot_dimension_numbers<[1], [0], [0], [1], [0, 0, 1, 1], [], []>} : vector<8x128xf32>, vector<128x384xf32>, vector<8x384xf32> -> vector<8x384xf32>
    %61 = vector.extract_strided_slice %57 {offsets = [0, 0], sizes = [8, 128], strides = [1, 1]} : vector<8x384xf32> to vector<8x128xf32>
    %62 = vector.extract_strided_slice %60 {offsets = [0, 0], sizes = [8, 128], strides = [1, 1]} : vector<8x384xf32> to vector<8x128xf32>
    %63 = arith.addf %61, %62 : vector<8x128xf32>
    %64 = arith.negf %63 : vector<8x128xf32>
    %65 = math.exp %64 : vector<8x128xf32>
    %cst_26 = arith.constant 1.000000e+00 : f32
    %66 = vector.broadcast %cst_26 : f32 to vector<8x128xf32>
    %67 = arith.addf %66, %65 : vector<8x128xf32>
    %68 = arith.divf %66, %67 : vector<8x128xf32>
    %69 = vector.extract_strided_slice %57 {offsets = [0, 128], sizes = [8, 128], strides = [1, 1]} : vector<8x384xf32> to vector<8x128xf32>
    %70 = vector.extract_strided_slice %60 {offsets = [0, 128], sizes = [8, 128], strides = [1, 1]} : vector<8x384xf32> to vector<8x128xf32>
    %71 = arith.addf %69, %70 : vector<8x128xf32>
    %72 = arith.negf %71 : vector<8x128xf32>
    %73 = math.exp %72 : vector<8x128xf32>
    %cst_27 = arith.constant 1.000000e+00 : f32
    %74 = vector.broadcast %cst_27 : f32 to vector<8x128xf32>
    %75 = arith.addf %74, %73 : vector<8x128xf32>
    %76 = arith.divf %74, %75 : vector<8x128xf32>
    %77 = vector.extract_strided_slice %57 {offsets = [0, 256], sizes = [8, 128], strides = [1, 1]} : vector<8x384xf32> to vector<8x128xf32>
    %78 = vector.extract_strided_slice %60 {offsets = [0, 256], sizes = [8, 128], strides = [1, 1]} : vector<8x384xf32> to vector<8x128xf32>
    %79 = arith.addf %78, %6 : vector<8x128xf32>
    %80 = arith.mulf %68, %79 : vector<8x128xf32>
    %81 = arith.addf %77, %80 : vector<8x128xf32>
    %82 = math.tanh %81 : vector<8x128xf32>
    %cst_28 = arith.constant 1.000000e+00 : f32
    %83 = vector.broadcast %cst_28 : f32 to vector<8x128xf32>
    %84 = arith.subf %83, %76 : vector<8x128xf32>
    %85 = arith.mulf %84, %82 : vector<8x128xf32>
    %86 = arith.mulf %76, %45 : vector<8x128xf32>
    %87 = arith.addf %85, %86 : vector<8x128xf32>
    %88 = arith.index_cast %53 : i32 to index
    %c0_29 = arith.constant 0 : index
    %c0_30 = arith.constant 0 : index
    %89 = vector.load %arg5[%88, %c0_29, %c0_30] : memref<8x8x128xf32, #tpu.memory_space<vmem>>, vector<1x8x128xf32>
    %90 = vector.shape_cast %89 : vector<1x8x128xf32> to vector<8x128xf32>
    %91 = vector.shape_cast %87 : vector<8x128xf32> to vector<1x8x128xf32>
    tpu.vector_store %arg5[%88, %c0_29, %c0_30], %91 {strides = array<i32>} : memref<8x8x128xf32, #tpu.memory_space<vmem>>, vector<1x8x128xf32>,
    %c2_i32_31 = arith.constant 2 : i32
    %c2_i32_32 = arith.constant 2 : i32
    %92 = arith.muli %c2_i32_32, %c2_i32_31 : i32
    %c7_i32_33 = arith.constant 7 : i32
    %93 = arith.subi %c7_i32_33, %92 : i32
    %94 = arith.muli %arg0, %93 : i32
    %95 = arith.addi %c2_i32_31, %94 : i32
    %c0_34 = arith.constant 0 : index
    %96 = arith.index_cast %95 : i32 to index
    %c0_35 = arith.constant 0 : index
    %c0_36 = arith.constant 0 : index
    %97 = vector.load %arg2[%c0_34, %96, %c0_35, %c0_36] : memref<1x8x8x384xbf16, #tpu.memory_space<vmem>>, vector<1x1x8x384xbf16>
    %98 = vector.shape_cast %97 : vector<1x1x8x384xbf16> to vector<8x384xbf16>
    %99 = arith.extf %98 : vector<8x384xbf16> to vector<8x384xf32>
    %c0_37 = arith.constant 0 : index
    %c0_38 = arith.constant 0 : index
    %c0_39 = arith.constant 0 : index
    %100 = vector.load %arg3[%c0_37, %c0_38, %c0_39] : memref<1x128x384xf32, #tpu.memory_space<vmem>>, vector<1x128x384xf32>
    %101 = vector.shape_cast %100 : vector<1x128x384xf32> to vector<128x384xf32>
    %cst_40 = arith.constant dense<0.000000e+00> : vector<8x384xf32>
    %102 = tpu.matmul %87, %101, %cst_40 {dimension_numbers = #tpu.dot_dimension_numbers<[1], [0], [0], [1], [0, 0, 1, 1], [], []>} : vector<8x128xf32>, vector<128x384xf32>, vector<8x384xf32> -> vector<8x384xf32>
    %103 = vector.extract_strided_slice %99 {offsets = [0, 0], sizes = [8, 128], strides = [1, 1]} : vector<8x384xf32> to vector<8x128xf32>
    %104 = vector.extract_strided_slice %102 {offsets = [0, 0], sizes = [8, 128], strides = [1, 1]} : vector<8x384xf32> to vector<8x128xf32>
    %105 = arith.addf %103, %104 : vector<8x128xf32>
    %106 = arith.negf %105 : vector<8x128xf32>
    %107 = math.exp %106 : vector<8x128xf32>
    %cst_41 = arith.constant 1.000000e+00 : f32
    %108 = vector.broadcast %cst_41 : f32 to vector<8x128xf32>
    %109 = arith.addf %108, %107 : vector<8x128xf32>
    %110 = arith.divf %108, %109 : vector<8x128xf32>
    %111 = vector.extract_strided_slice %99 {offsets = [0, 128], sizes = [8, 128], strides = [1, 1]} : vector<8x384xf32> to vector<8x128xf32>
    %112 = vector.extract_strided_slice %102 {offsets = [0, 128], sizes = [8, 128], strides = [1, 1]} : vector<8x384xf32> to vector<8x128xf32>
    %113 = arith.addf %111, %112 : vector<8x128xf32>
    %114 = arith.negf %113 : vector<8x128xf32>
    %115 = math.exp %114 : vector<8x128xf32>
    %cst_42 = arith.constant 1.000000e+00 : f32
    %116 = vector.broadcast %cst_42 : f32 to vector<8x128xf32>
    %117 = arith.addf %116, %115 : vector<8x128xf32>
    %118 = arith.divf %116, %117 : vector<8x128xf32>
    %119 = vector.extract_strided_slice %99 {offsets = [0, 256], sizes = [8, 128], strides = [1, 1]} : vector<8x384xf32> to vector<8x128xf32>
    %120 = vector.extract_strided_slice %102 {offsets = [0, 256], sizes = [8, 128], strides = [1, 1]} : vector<8x384xf32> to vector<8x128xf32>
    %121 = arith.addf %120, %6 : vector<8x128xf32>
    %122 = arith.mulf %110, %121 : vector<8x128xf32>
    %123 = arith.addf %119, %122 : vector<8x128xf32>
    %124 = math.tanh %123 : vector<8x128xf32>
    %cst_43 = arith.constant 1.000000e+00 : f32
    %125 = vector.broadcast %cst_43 : f32 to vector<8x128xf32>
    %126 = arith.subf %125, %118 : vector<8x128xf32>
    %127 = arith.mulf %126, %124 : vector<8x128xf32>
    %128 = arith.mulf %118, %87 : vector<8x128xf32>
    %129 = arith.addf %127, %128 : vector<8x128xf32>
    %130 = arith.index_cast %95 : i32 to index
    %c0_44 = arith.constant 0 : index
    %c0_45 = arith.constant 0 : index
    %131 = vector.load %arg5[%130, %c0_44, %c0_45] : memref<8x8x128xf32, #tpu.memory_space<vmem>>, vector<1x8x128xf32>
    %132 = vector.shape_cast %131 : vector<1x8x128xf32> to vector<8x128xf32>
    %133 = vector.shape_cast %129 : vector<8x128xf32> to vector<1x8x128xf32>
    tpu.vector_store %arg5[%130, %c0_44, %c0_45], %133 {strides = array<i32>} : memref<8x8x128xf32, #tpu.memory_space<vmem>>, vector<1x8x128xf32>,
    %c3_i32 = arith.constant 3 : i32
    %c2_i32_46 = arith.constant 2 : i32
    %134 = arith.muli %c2_i32_46, %c3_i32 : i32
    %c7_i32_47 = arith.constant 7 : i32
    %135 = arith.subi %c7_i32_47, %134 : i32
    %136 = arith.muli %arg0, %135 : i32
    %137 = arith.addi %c3_i32, %136 : i32
    %c0_48 = arith.constant 0 : index
    %138 = arith.index_cast %137 : i32 to index
    %c0_49 = arith.constant 0 : index
    %c0_50 = arith.constant 0 : index
    %139 = vector.load %arg2[%c0_48, %138, %c0_49, %c0_50] : memref<1x8x8x384xbf16, #tpu.memory_space<vmem>>, vector<1x1x8x384xbf16>
    %140 = vector.shape_cast %139 : vector<1x1x8x384xbf16> to vector<8x384xbf16>
    %141 = arith.extf %140 : vector<8x384xbf16> to vector<8x384xf32>
    %c0_51 = arith.constant 0 : index
    %c0_52 = arith.constant 0 : index
    %c0_53 = arith.constant 0 : index
    %142 = vector.load %arg3[%c0_51, %c0_52, %c0_53] : memref<1x128x384xf32, #tpu.memory_space<vmem>>, vector<1x128x384xf32>
    %143 = vector.shape_cast %142 : vector<1x128x384xf32> to vector<128x384xf32>
    %cst_54 = arith.constant dense<0.000000e+00> : vector<8x384xf32>
    %144 = tpu.matmul %129, %143, %cst_54 {dimension_numbers = #tpu.dot_dimension_numbers<[1], [0], [0], [1], [0, 0, 1, 1], [], []>} : vector<8x128xf32>, vector<128x384xf32>, vector<8x384xf32> -> vector<8x384xf32>
    %145 = vector.extract_strided_slice %141 {offsets = [0, 0], sizes = [8, 128], strides = [1, 1]} : vector<8x384xf32> to vector<8x128xf32>
    %146 = vector.extract_strided_slice %144 {offsets = [0, 0], sizes = [8, 128], strides = [1, 1]} : vector<8x384xf32> to vector<8x128xf32>
    %147 = arith.addf %145, %146 : vector<8x128xf32>
    %148 = arith.negf %147 : vector<8x128xf32>
    %149 = math.exp %148 : vector<8x128xf32>
    %cst_55 = arith.constant 1.000000e+00 : f32
    %150 = vector.broadcast %cst_55 : f32 to vector<8x128xf32>
    %151 = arith.addf %150, %149 : vector<8x128xf32>
    %152 = arith.divf %150, %151 : vector<8x128xf32>
    %153 = vector.extract_strided_slice %141 {offsets = [0, 128], sizes = [8, 128], strides = [1, 1]} : vector<8x384xf32> to vector<8x128xf32>
    %154 = vector.extract_strided_slice %144 {offsets = [0, 128], sizes = [8, 128], strides = [1, 1]} : vector<8x384xf32> to vector<8x128xf32>
    %155 = arith.addf %153, %154 : vector<8x128xf32>
    %156 = arith.negf %155 : vector<8x128xf32>
    %157 = math.exp %156 : vector<8x128xf32>
    %cst_56 = arith.constant 1.000000e+00 : f32
    %158 = vector.broadcast %cst_56 : f32 to vector<8x128xf32>
    %159 = arith.addf %158, %157 : vector<8x128xf32>
    %160 = arith.divf %158, %159 : vector<8x128xf32>
    %161 = vector.extract_strided_slice %141 {offsets = [0, 256], sizes = [8, 128], strides = [1, 1]} : vector<8x384xf32> to vector<8x128xf32>
    %162 = vector.extract_strided_slice %144 {offsets = [0, 256], sizes = [8, 128], strides = [1, 1]} : vector<8x384xf32> to vector<8x128xf32>
    %163 = arith.addf %162, %6 : vector<8x128xf32>
    %164 = arith.mulf %152, %163 : vector<8x128xf32>
    %165 = arith.addf %161, %164 : vector<8x128xf32>
    %166 = math.tanh %165 : vector<8x128xf32>
    %cst_57 = arith.constant 1.000000e+00 : f32
    %167 = vector.broadcast %cst_57 : f32 to vector<8x128xf32>
    %168 = arith.subf %167, %160 : vector<8x128xf32>
    %169 = arith.mulf %168, %166 : vector<8x128xf32>
    %170 = arith.mulf %160, %129 : vector<8x128xf32>
    %171 = arith.addf %169, %170 : vector<8x128xf32>
    %172 = arith.index_cast %137 : i32 to index
    %c0_58 = arith.constant 0 : index
    %c0_59 = arith.constant 0 : index
    %173 = vector.load %arg5[%172, %c0_58, %c0_59] : memref<8x8x128xf32, #tpu.memory_space<vmem>>, vector<1x8x128xf32>
    %174 = vector.shape_cast %173 : vector<1x8x128xf32> to vector<8x128xf32>
    %175 = vector.shape_cast %171 : vector<8x128xf32> to vector<1x8x128xf32>
    tpu.vector_store %arg5[%172, %c0_58, %c0_59], %175 {strides = array<i32>} : memref<8x8x128xf32, #tpu.memory_space<vmem>>, vector<1x8x128xf32>,
    %c4_i32 = arith.constant 4 : i32
    %c2_i32_60 = arith.constant 2 : i32
    %176 = arith.muli %c2_i32_60, %c4_i32 : i32
    %c7_i32_61 = arith.constant 7 : i32
    %177 = arith.subi %c7_i32_61, %176 : i32
    %178 = arith.muli %arg0, %177 : i32
    %179 = arith.addi %c4_i32, %178 : i32
    %c0_62 = arith.constant 0 : index
    %180 = arith.index_cast %179 : i32 to index
    %c0_63 = arith.constant 0 : index
    %c0_64 = arith.constant 0 : index
    %181 = vector.load %arg2[%c0_62, %180, %c0_63, %c0_64] : memref<1x8x8x384xbf16, #tpu.memory_space<vmem>>, vector<1x1x8x384xbf16>
    %182 = vector.shape_cast %181 : vector<1x1x8x384xbf16> to vector<8x384xbf16>
    %183 = arith.extf %182 : vector<8x384xbf16> to vector<8x384xf32>
    %c0_65 = arith.constant 0 : index
    %c0_66 = arith.constant 0 : index
    %c0_67 = arith.constant 0 : index
    %184 = vector.load %arg3[%c0_65, %c0_66, %c0_67] : memref<1x128x384xf32, #tpu.memory_space<vmem>>, vector<1x128x384xf32>
    %185 = vector.shape_cast %184 : vector<1x128x384xf32> to vector<128x384xf32>
    %cst_68 = arith.constant dense<0.000000e+00> : vector<8x384xf32>
    %186 = tpu.matmul %171, %185, %cst_68 {dimension_numbers = #tpu.dot_dimension_numbers<[1], [0], [0], [1], [0, 0, 1, 1], [], []>} : vector<8x128xf32>, vector<128x384xf32>, vector<8x384xf32> -> vector<8x384xf32>
    %187 = vector.extract_strided_slice %183 {offsets = [0, 0], sizes = [8, 128], strides = [1, 1]} : vector<8x384xf32> to vector<8x128xf32>
    %188 = vector.extract_strided_slice %186 {offsets = [0, 0], sizes = [8, 128], strides = [1, 1]} : vector<8x384xf32> to vector<8x128xf32>
    %189 = arith.addf %187, %188 : vector<8x128xf32>
    %190 = arith.negf %189 : vector<8x128xf32>
    %191 = math.exp %190 : vector<8x128xf32>
    %cst_69 = arith.constant 1.000000e+00 : f32
    %192 = vector.broadcast %cst_69 : f32 to vector<8x128xf32>
    %193 = arith.addf %192, %191 : vector<8x128xf32>
    %194 = arith.divf %192, %193 : vector<8x128xf32>
    %195 = vector.extract_strided_slice %183 {offsets = [0, 128], sizes = [8, 128], strides = [1, 1]} : vector<8x384xf32> to vector<8x128xf32>
    %196 = vector.extract_strided_slice %186 {offsets = [0, 128], sizes = [8, 128], strides = [1, 1]} : vector<8x384xf32> to vector<8x128xf32>
    %197 = arith.addf %195, %196 : vector<8x128xf32>
    %198 = arith.negf %197 : vector<8x128xf32>
    %199 = math.exp %198 : vector<8x128xf32>
    %cst_70 = arith.constant 1.000000e+00 : f32
    %200 = vector.broadcast %cst_70 : f32 to vector<8x128xf32>
    %201 = arith.addf %200, %199 : vector<8x128xf32>
    %202 = arith.divf %200, %201 : vector<8x128xf32>
    %203 = vector.extract_strided_slice %183 {offsets = [0, 256], sizes = [8, 128], strides = [1, 1]} : vector<8x384xf32> to vector<8x128xf32>
    %204 = vector.extract_strided_slice %186 {offsets = [0, 256], sizes = [8, 128], strides = [1, 1]} : vector<8x384xf32> to vector<8x128xf32>
    %205 = arith.addf %204, %6 : vector<8x128xf32>
    %206 = arith.mulf %194, %205 : vector<8x128xf32>
    %207 = arith.addf %203, %206 : vector<8x128xf32>
    %208 = math.tanh %207 : vector<8x128xf32>
    %cst_71 = arith.constant 1.000000e+00 : f32
    %209 = vector.broadcast %cst_71 : f32 to vector<8x128xf32>
    %210 = arith.subf %209, %202 : vector<8x128xf32>
    %211 = arith.mulf %210, %208 : vector<8x128xf32>
    %212 = arith.mulf %202, %171 : vector<8x128xf32>
    %213 = arith.addf %211, %212 : vector<8x128xf32>
    %214 = arith.index_cast %179 : i32 to index
    %c0_72 = arith.constant 0 : index
    %c0_73 = arith.constant 0 : index
    %215 = vector.load %arg5[%214, %c0_72, %c0_73] : memref<8x8x128xf32, #tpu.memory_space<vmem>>, vector<1x8x128xf32>
    %216 = vector.shape_cast %215 : vector<1x8x128xf32> to vector<8x128xf32>
    %217 = vector.shape_cast %213 : vector<8x128xf32> to vector<1x8x128xf32>
    tpu.vector_store %arg5[%214, %c0_72, %c0_73], %217 {strides = array<i32>} : memref<8x8x128xf32, #tpu.memory_space<vmem>>, vector<1x8x128xf32>,
    %c5_i32 = arith.constant 5 : i32
    %c2_i32_74 = arith.constant 2 : i32
    %218 = arith.muli %c2_i32_74, %c5_i32 : i32
    %c7_i32_75 = arith.constant 7 : i32
    %219 = arith.subi %c7_i32_75, %218 : i32
    %220 = arith.muli %arg0, %219 : i32
    %221 = arith.addi %c5_i32, %220 : i32
    %c0_76 = arith.constant 0 : index
    %222 = arith.index_cast %221 : i32 to index
    %c0_77 = arith.constant 0 : index
    %c0_78 = arith.constant 0 : index
    %223 = vector.load %arg2[%c0_76, %222, %c0_77, %c0_78] : memref<1x8x8x384xbf16, #tpu.memory_space<vmem>>, vector<1x1x8x384xbf16>
    %224 = vector.shape_cast %223 : vector<1x1x8x384xbf16> to vector<8x384xbf16>
    %225 = arith.extf %224 : vector<8x384xbf16> to vector<8x384xf32>
    %c0_79 = arith.constant 0 : index
    %c0_80 = arith.constant 0 : index
    %c0_81 = arith.constant 0 : index
    %226 = vector.load %arg3[%c0_79, %c0_80, %c0_81] : memref<1x128x384xf32, #tpu.memory_space<vmem>>, vector<1x128x384xf32>
    %227 = vector.shape_cast %226 : vector<1x128x384xf32> to vector<128x384xf32>
    %cst_82 = arith.constant dense<0.000000e+00> : vector<8x384xf32>
    %228 = tpu.matmul %213, %227, %cst_82 {dimension_numbers = #tpu.dot_dimension_numbers<[1], [0], [0], [1], [0, 0, 1, 1], [], []>} : vector<8x128xf32>, vector<128x384xf32>, vector<8x384xf32> -> vector<8x384xf32>
    %229 = vector.extract_strided_slice %225 {offsets = [0, 0], sizes = [8, 128], strides = [1, 1]} : vector<8x384xf32> to vector<8x128xf32>
    %230 = vector.extract_strided_slice %228 {offsets = [0, 0], sizes = [8, 128], strides = [1, 1]} : vector<8x384xf32> to vector<8x128xf32>
    %231 = arith.addf %229, %230 : vector<8x128xf32>
    %232 = arith.negf %231 : vector<8x128xf32>
    %233 = math.exp %232 : vector<8x128xf32>
    %cst_83 = arith.constant 1.000000e+00 : f32
    %234 = vector.broadcast %cst_83 : f32 to vector<8x128xf32>
    %235 = arith.addf %234, %233 : vector<8x128xf32>
    %236 = arith.divf %234, %235 : vector<8x128xf32>
    %237 = vector.extract_strided_slice %225 {offsets = [0, 128], sizes = [8, 128], strides = [1, 1]} : vector<8x384xf32> to vector<8x128xf32>
    %238 = vector.extract_strided_slice %228 {offsets = [0, 128], sizes = [8, 128], strides = [1, 1]} : vector<8x384xf32> to vector<8x128xf32>
    %239 = arith.addf %237, %238 : vector<8x128xf32>
    %240 = arith.negf %239 : vector<8x128xf32>
    %241 = math.exp %240 : vector<8x128xf32>
    %cst_84 = arith.constant 1.000000e+00 : f32
    %242 = vector.broadcast %cst_84 : f32 to vector<8x128xf32>
    %243 = arith.addf %242, %241 : vector<8x128xf32>
    %244 = arith.divf %242, %243 : vector<8x128xf32>
    %245 = vector.extract_strided_slice %225 {offsets = [0, 256], sizes = [8, 128], strides = [1, 1]} : vector<8x384xf32> to vector<8x128xf32>
    %246 = vector.extract_strided_slice %228 {offsets = [0, 256], sizes = [8, 128], strides = [1, 1]} : vector<8x384xf32> to vector<8x128xf32>
    %247 = arith.addf %246, %6 : vector<8x128xf32>
    %248 = arith.mulf %236, %247 : vector<8x128xf32>
    %249 = arith.addf %245, %248 : vector<8x128xf32>
    %250 = math.tanh %249 : vector<8x128xf32>
    %cst_85 = arith.constant 1.000000e+00 : f32
    %251 = vector.broadcast %cst_85 : f32 to vector<8x128xf32>
    %252 = arith.subf %251, %244 : vector<8x128xf32>
    %253 = arith.mulf %252, %250 : vector<8x128xf32>
    %254 = arith.mulf %244, %213 : vector<8x128xf32>
    %255 = arith.addf %253, %254 : vector<8x128xf32>
    %256 = arith.index_cast %221 : i32 to index
    %c0_86 = arith.constant 0 : index
    %c0_87 = arith.constant 0 : index
    %257 = vector.load %arg5[%256, %c0_86, %c0_87] : memref<8x8x128xf32, #tpu.memory_space<vmem>>, vector<1x8x128xf32>
    %258 = vector.shape_cast %257 : vector<1x8x128xf32> to vector<8x128xf32>
    %259 = vector.shape_cast %255 : vector<8x128xf32> to vector<1x8x128xf32>
    tpu.vector_store %arg5[%256, %c0_86, %c0_87], %259 {strides = array<i32>} : memref<8x8x128xf32, #tpu.memory_space<vmem>>, vector<1x8x128xf32>,
    %c6_i32 = arith.constant 6 : i32
    %c2_i32_88 = arith.constant 2 : i32
    %260 = arith.muli %c2_i32_88, %c6_i32 : i32
    %c7_i32_89 = arith.constant 7 : i32
    %261 = arith.subi %c7_i32_89, %260 : i32
    %262 = arith.muli %arg0, %261 : i32
    %263 = arith.addi %c6_i32, %262 : i32
    %c0_90 = arith.constant 0 : index
    %264 = arith.index_cast %263 : i32 to index
    %c0_91 = arith.constant 0 : index
    %c0_92 = arith.constant 0 : index
    %265 = vector.load %arg2[%c0_90, %264, %c0_91, %c0_92] : memref<1x8x8x384xbf16, #tpu.memory_space<vmem>>, vector<1x1x8x384xbf16>
    %266 = vector.shape_cast %265 : vector<1x1x8x384xbf16> to vector<8x384xbf16>
    %267 = arith.extf %266 : vector<8x384xbf16> to vector<8x384xf32>
    %c0_93 = arith.constant 0 : index
    %c0_94 = arith.constant 0 : index
    %c0_95 = arith.constant 0 : index
    %268 = vector.load %arg3[%c0_93, %c0_94, %c0_95] : memref<1x128x384xf32, #tpu.memory_space<vmem>>, vector<1x128x384xf32>
    %269 = vector.shape_cast %268 : vector<1x128x384xf32> to vector<128x384xf32>
    %cst_96 = arith.constant dense<0.000000e+00> : vector<8x384xf32>
    %270 = tpu.matmul %255, %269, %cst_96 {dimension_numbers = #tpu.dot_dimension_numbers<[1], [0], [0], [1], [0, 0, 1, 1], [], []>} : vector<8x128xf32>, vector<128x384xf32>, vector<8x384xf32> -> vector<8x384xf32>
    %271 = vector.extract_strided_slice %267 {offsets = [0, 0], sizes = [8, 128], strides = [1, 1]} : vector<8x384xf32> to vector<8x128xf32>
    %272 = vector.extract_strided_slice %270 {offsets = [0, 0], sizes = [8, 128], strides = [1, 1]} : vector<8x384xf32> to vector<8x128xf32>
    %273 = arith.addf %271, %272 : vector<8x128xf32>
    %274 = arith.negf %273 : vector<8x128xf32>
    %275 = math.exp %274 : vector<8x128xf32>
    %cst_97 = arith.constant 1.000000e+00 : f32
    %276 = vector.broadcast %cst_97 : f32 to vector<8x128xf32>
    %277 = arith.addf %276, %275 : vector<8x128xf32>
    %278 = arith.divf %276, %277 : vector<8x128xf32>
    %279 = vector.extract_strided_slice %267 {offsets = [0, 128], sizes = [8, 128], strides = [1, 1]} : vector<8x384xf32> to vector<8x128xf32>
    %280 = vector.extract_strided_slice %270 {offsets = [0, 128], sizes = [8, 128], strides = [1, 1]} : vector<8x384xf32> to vector<8x128xf32>
    %281 = arith.addf %279, %280 : vector<8x128xf32>
    %282 = arith.negf %281 : vector<8x128xf32>
    %283 = math.exp %282 : vector<8x128xf32>
    %cst_98 = arith.constant 1.000000e+00 : f32
    %284 = vector.broadcast %cst_98 : f32 to vector<8x128xf32>
    %285 = arith.addf %284, %283 : vector<8x128xf32>
    %286 = arith.divf %284, %285 : vector<8x128xf32>
    %287 = vector.extract_strided_slice %267 {offsets = [0, 256], sizes = [8, 128], strides = [1, 1]} : vector<8x384xf32> to vector<8x128xf32>
    %288 = vector.extract_strided_slice %270 {offsets = [0, 256], sizes = [8, 128], strides = [1, 1]} : vector<8x384xf32> to vector<8x128xf32>
    %289 = arith.addf %288, %6 : vector<8x128xf32>
    %290 = arith.mulf %278, %289 : vector<8x128xf32>
    %291 = arith.addf %287, %290 : vector<8x128xf32>
    %292 = math.tanh %291 : vector<8x128xf32>
    %cst_99 = arith.constant 1.000000e+00 : f32
    %293 = vector.broadcast %cst_99 : f32 to vector<8x128xf32>
    %294 = arith.subf %293, %286 : vector<8x128xf32>
    %295 = arith.mulf %294, %292 : vector<8x128xf32>
    %296 = arith.mulf %286, %255 : vector<8x128xf32>
    %297 = arith.addf %295, %296 : vector<8x128xf32>
    %298 = arith.index_cast %263 : i32 to index
    %c0_100 = arith.constant 0 : index
    %c0_101 = arith.constant 0 : index
    %299 = vector.load %arg5[%298, %c0_100, %c0_101] : memref<8x8x128xf32, #tpu.memory_space<vmem>>, vector<1x8x128xf32>
    %300 = vector.shape_cast %299 : vector<1x8x128xf32> to vector<8x128xf32>
    %301 = vector.shape_cast %297 : vector<8x128xf32> to vector<1x8x128xf32>
    tpu.vector_store %arg5[%298, %c0_100, %c0_101], %301 {strides = array<i32>} : memref<8x8x128xf32, #tpu.memory_space<vmem>>, vector<1x8x128xf32>,
    %c7_i32_102 = arith.constant 7 : i32
    %c2_i32_103 = arith.constant 2 : i32
    %302 = arith.muli %c2_i32_103, %c7_i32_102 : i32
    %c7_i32_104 = arith.constant 7 : i32
    %303 = arith.subi %c7_i32_104, %302 : i32
    %304 = arith.muli %arg0, %303 : i32
    %305 = arith.addi %c7_i32_102, %304 : i32
    %c0_105 = arith.constant 0 : index
    %306 = arith.index_cast %305 : i32 to index
    %c0_106 = arith.constant 0 : index
    %c0_107 = arith.constant 0 : index
    %307 = vector.load %arg2[%c0_105, %306, %c0_106, %c0_107] : memref<1x8x8x384xbf16, #tpu.memory_space<vmem>>, vector<1x1x8x384xbf16>
    %308 = vector.shape_cast %307 : vector<1x1x8x384xbf16> to vector<8x384xbf16>
    %309 = arith.extf %308 : vector<8x384xbf16> to vector<8x384xf32>
    %c0_108 = arith.constant 0 : index
    %c0_109 = arith.constant 0 : index
    %c0_110 = arith.constant 0 : index
    %310 = vector.load %arg3[%c0_108, %c0_109, %c0_110] : memref<1x128x384xf32, #tpu.memory_space<vmem>>, vector<1x128x384xf32>
    %311 = vector.shape_cast %310 : vector<1x128x384xf32> to vector<128x384xf32>
    %cst_111 = arith.constant dense<0.000000e+00> : vector<8x384xf32>
    %312 = tpu.matmul %297, %311, %cst_111 {dimension_numbers = #tpu.dot_dimension_numbers<[1], [0], [0], [1], [0, 0, 1, 1], [], []>} : vector<8x128xf32>, vector<128x384xf32>, vector<8x384xf32> -> vector<8x384xf32>
    %313 = vector.extract_strided_slice %309 {offsets = [0, 0], sizes = [8, 128], strides = [1, 1]} : vector<8x384xf32> to vector<8x128xf32>
    %314 = vector.extract_strided_slice %312 {offsets = [0, 0], sizes = [8, 128], strides = [1, 1]} : vector<8x384xf32> to vector<8x128xf32>
    %315 = arith.addf %313, %314 : vector<8x128xf32>
    %316 = arith.negf %315 : vector<8x128xf32>
    %317 = math.exp %316 : vector<8x128xf32>
    %cst_112 = arith.constant 1.000000e+00 : f32
    %318 = vector.broadcast %cst_112 : f32 to vector<8x128xf32>
    %319 = arith.addf %318, %317 : vector<8x128xf32>
    %320 = arith.divf %318, %319 : vector<8x128xf32>
    %321 = vector.extract_strided_slice %309 {offsets = [0, 128], sizes = [8, 128], strides = [1, 1]} : vector<8x384xf32> to vector<8x128xf32>
    %322 = vector.extract_strided_slice %312 {offsets = [0, 128], sizes = [8, 128], strides = [1, 1]} : vector<8x384xf32> to vector<8x128xf32>
    %323 = arith.addf %321, %322 : vector<8x128xf32>
    %324 = arith.negf %323 : vector<8x128xf32>
    %325 = math.exp %324 : vector<8x128xf32>
    %cst_113 = arith.constant 1.000000e+00 : f32
    %326 = vector.broadcast %cst_113 : f32 to vector<8x128xf32>
    %327 = arith.addf %326, %325 : vector<8x128xf32>
    %328 = arith.divf %326, %327 : vector<8x128xf32>
    %329 = vector.extract_strided_slice %309 {offsets = [0, 256], sizes = [8, 128], strides = [1, 1]} : vector<8x384xf32> to vector<8x128xf32>
    %330 = vector.extract_strided_slice %312 {offsets = [0, 256], sizes = [8, 128], strides = [1, 1]} : vector<8x384xf32> to vector<8x128xf32>
    %331 = arith.addf %330, %6 : vector<8x128xf32>
    %332 = arith.mulf %320, %331 : vector<8x128xf32>
    %333 = arith.addf %329, %332 : vector<8x128xf32>
    %334 = math.tanh %333 : vector<8x128xf32>
    %cst_114 = arith.constant 1.000000e+00 : f32
    %335 = vector.broadcast %cst_114 : f32 to vector<8x128xf32>
    %336 = arith.subf %335, %328 : vector<8x128xf32>
    %337 = arith.mulf %336, %334 : vector<8x128xf32>
    %338 = arith.mulf %328, %297 : vector<8x128xf32>
    %339 = arith.addf %337, %338 : vector<8x128xf32>
    %340 = arith.index_cast %305 : i32 to index
    %c0_115 = arith.constant 0 : index
    %c0_116 = arith.constant 0 : index
    %341 = vector.load %arg5[%340, %c0_115, %c0_116] : memref<8x8x128xf32, #tpu.memory_space<vmem>>, vector<1x8x128xf32>
    %342 = vector.shape_cast %341 : vector<1x8x128xf32> to vector<8x128xf32>
    %343 = vector.shape_cast %339 : vector<8x128xf32> to vector<1x8x128xf32>
    tpu.vector_store %arg5[%340, %c0_115, %c0_116], %343 {strides = array<i32>} : memref<8x8x128xf32, #tpu.memory_space<vmem>>, vector<1x8x128xf32>,
    %c8_i32 = arith.constant 8 : i32
    %c0_117 = arith.constant 0 : index
    %c0_118 = arith.constant 0 : index
    %344 = vector.load %arg7[%c0_117, %c0_118] : memref<8x128xf32, #tpu.memory_space<vmem>>, vector<8x128xf32>
    tpu.vector_store %arg7[%c0_117, %c0_118], %339 {strides = array<i32>} : memref<8x128xf32, #tpu.memory_space<vmem>>, vector<8x128xf32>,
    %c0_i32_119 = arith.constant 0 : i32
    %345 = arith.cmpi eq, %arg1, %c0_i32_119 : i32
    %346 = arith.extui %345 : i1 to i32
    %c0_i32_120 = arith.constant 0 : i32
    %347 = arith.cmpi ne, %346, %c0_i32_120 : i32
    scf.if %347 {
      %c0_121 = arith.constant 0 : index
      %c0_122 = arith.constant 0 : index
      %c0_123 = arith.constant 0 : index
      %348 = vector.load %arg6[%c0_121, %c0_122, %c0_123] : memref<1x8x128xf32, #tpu.memory_space<vmem>>, vector<1x8x128xf32>
      %349 = vector.shape_cast %348 : vector<1x8x128xf32> to vector<8x128xf32>
      %350 = vector.shape_cast %339 : vector<8x128xf32> to vector<1x8x128xf32>
      tpu.vector_store %arg6[%c0_121, %c0_122, %c0_123], %350 {strides = array<i32>} : memref<1x8x128xf32, #tpu.memory_space<vmem>>, vector<1x8x128xf32>,
    } else {
    }
    return
  }
  func.func @transform_0(%arg0: i32, %arg1: i32) -> (i32, i32, i32, i32) {
    %c2_i32 = arith.constant 2 : i32
    %0 = arith.muli %c2_i32, %arg1 : i32
    %c0_i32 = arith.constant 0 : i32
    %1 = arith.subi %c0_i32, %0 : i32
    %2 = arith.muli %arg0, %1 : i32
    %3 = arith.addi %arg1, %2 : i32
    %c0_i32_0 = arith.constant 0 : i32
    %c0_i32_1 = arith.constant 0 : i32
    %c0_i32_2 = arith.constant 0 : i32
    return %arg0, %3, %c0_i32_0, %c0_i32_1 : i32, i32, i32, i32
  }
  func.func @transform_1(%arg0: i32, %arg1: i32) -> (i32, i32, i32) {
    %c0_i32 = arith.constant 0 : i32
    %c0_i32_0 = arith.constant 0 : i32
    %c0_i32_1 = arith.constant 0 : i32
    return %arg0, %c0_i32, %c0_i32_0 : i32, i32, i32
  }
  func.func @transform_2(%arg0: i32, %arg1: i32) -> (i32, i32, i32) {
    %c0_i32 = arith.constant 0 : i32
    %c0_i32_0 = arith.constant 0 : i32
    %c0_i32_1 = arith.constant 0 : i32
    return %arg0, %c0_i32, %c0_i32_0 : i32, i32, i32
  }
  func.func @transform_3(%arg0: i32, %arg1: i32) -> (i32, i32, i32) {
    %c2_i32 = arith.constant 2 : i32
    %0 = arith.muli %c2_i32, %arg1 : i32
    %c0_i32 = arith.constant 0 : i32
    %1 = arith.subi %c0_i32, %0 : i32
    %2 = arith.muli %arg0, %1 : i32
    %3 = arith.addi %arg1, %2 : i32
    %c0_i32_0 = arith.constant 0 : i32
    %c0_i32_1 = arith.constant 0 : i32
    return %3, %c0_i32_0, %arg0 : i32, i32, i32
  }
  func.func @transform_4(%arg0: i32, %arg1: i32) -> (i32, i32, i32) {
    %c0_i32 = arith.constant 0 : i32
    %c0_i32_0 = arith.constant 0 : i32
    %c0_i32_1 = arith.constant 0 : i32
    return %arg0, %c0_i32, %c0_i32_0 : i32, i32, i32
  }
}

</mosaic_0001>

<bundles_post_ra>
// kernel: tpu_custom_call.1
= control target key start
LH: loop header
LB: loop body
LE: loop exit
PB: predicated region body
PF: predicated region fallthrough
CT: control target
= control target key end

     0   :  { %10 = vsyncpa [#allocation4], 0  ;;  %s4522_s0 = inlined_call_operand.hbm [shape: bf16[2,8,8,384], index: 0, kind: input, shape index: {}]   ;;  %s4523_s1 = inlined_call_operand.hbm [shape: f32[2,128,384], index: 1, kind: input, shape index: {}]   ;;  %s4524_s2 = inlined_call_operand.vmem [shape: f32[2,1,128], index: 2, kind: input, shape index: {}]   ;;  %s4525_s3 = inlined_call_operand.hbm [shape: f32[8,8,256], index: 3, kind: output, shape index: {0}]   ;;  %s4526_s4 = inlined_call_operand.hbm [shape: f32[2,8,128], index: 4, kind: output, shape index: {1}]  }
   0x1   :  { %12 = vsyncpa [#allocation4 + $0x1], 0 }
   0x2   :  { %13 = vsyncpa [#allocation7], 0 }
   0x3   :  { %15 = vsyncpa [#allocation7 + $0x1], 0 }
   0x4   :  { %16 = vsyncpa [#allocation5], 0 }
   0x5   :  { %18 = vsyncpa [#allocation5 + $0x1], 0 }
   0x6   :  { %19 = vsyncpa [#allocation10], 0 }
   0x7   :  { %21 = vsyncpa [#allocation10 + $0x1], 0  ;;  %s3701_s15 = smov 0   ;;  %s3703_s16 = smov 0  }
   0x8   :  { %s3705_s17 = smov 0   ;;  %s3707_s18 = smov 0  }
   0x9   :  { %s3709_s19 = smov 0   ;;  %s3711_s20 = smov 0  }
   0xa LB: > { %s2381_s21 = sadd.s32 4294967295, %s3660_s20   ;;  %s2382_s22 = sadd.s32 4294967294, %s3660_s20   ;;  %s3660_s20 = sphi %s3711_s20, %s27_s20   ;;  %s3656_s19 = sphi %s3709_s19, %s4544_s19   ;;  %s3652_s18 = sphi %s3707_s18, %s4543_s18   ;;  %s3648_s17 = sphi %s3705_s17, %s4542_s17   ;;  %s3644_s16 = sphi %s3703_s16, %s4541_s16   ;;  %s3640_s15 = sphi %s3701_s15, %s4540_s15  }
   0xb   : > { %s39_s23 = sadd.s32 1, %s3656_s19  ;;  %s56_s24 = sadd.s32 1, %s3648_s17 }
   0xc   : > { %p41_p0 = scmp.ge.s32.totalorder %s39_s23, 2  ;;  %p63_p1 = scmp.ne.s32.totalorder %s3648_s17, %s3644_s16 }
   0xd   : > { %p64_p2 = scmp.eq.s32.totalorder %s3660_s20, 0  ;;  %p69_p3 = scmp.ne.s32.totalorder %s3644_s16, %s3640_s15 }
   0xe   : > { %s4546_s23 = smov (%p41_p0, %s39_s23), 0  ;;  %p70_p5 = scmp.eq.s32.totalorder %s2381_s21, 0 }
   0xf   : > { %p3742_p4 = por %p64_p2, %p63_p1  ;;  %s51_s26 = ssub.s32 %s3656_s19, %s4546_s23 }
  0x10   : > { %p155_p6 = scmp.eq.s32.totalorder %s2381_s21, 1  ;;  %p54_p7 = scmp.eq.s32.totalorder %s51_s26, 0 }
  0x11   : > { %p3748_p8 = por %p70_p5, %p69_p3  ;;  %p161_p10 = scmp.eq.s32.totalorder %s2382_s22, 1 }
  0x12   : > { %p3752_p9 = por %p155_p6, %p63_p1  ;;  %p3341_p13 = scmp.lt.s32.totalorder %s3660_s20, 2 }
  0x13   : > { %s4530_s27 = scalar_select %p3748_p8, 1, 0 }
  0x14   : > { %s4531_s28 = scalar_select %p3752_p9, 1, 0 }
  0x15   : > { %s3757_s29 = scalar_select %p54_p7, %s3648_s17, %s56_s24  }
  0x16   : > { %p3759_p11 = por %p161_p10, %p69_p3  ;;  %s3766_s5 = sand.u32 1, %s3648_s17  }
  0x17   : > { %s3313_s6 = smul.u32 96, %s3766_s5  ;;  %p3772_p0 = pnand %p3341_p13, %p3742_p4 }
  0x18   : > { %s4532_s30 = scalar_select %p3759_p11, 1, 0 }
  0x19   : > { %s3314_s7 = smul.u32 1536, %s3656_s19  ;;  %s211_s12 = scalar_lea.vmem [#allocation3], %s3313_s6 }
  0x1a   : > { %s225_s13 = sshll.u32 %s211_s12, 4  ;;  %s208_s14 = scalar_lea.sflag [#allocation4], %s3766_s5  ;;  %s3781_s13 = int_to_ptr.vmem [resolvable:$true] %s225_s13 }
  0x1b   : > { %s3779_s11 = scalar_lea.hbm %s4522_s0, %s3314_s7  ;;  %p3484_p3 = pneg %p3772_p0 }
  0x1c   : > { %s3482_s21 = scalar_lea.hbm %s3779_s11, 1536  ;;  %s3487_s25 = scalar_lea.hbm %s4522_s0, 3072 }
  0x1d   : > { %p3483_p2 = scmp.ne.s32.totalorder %s3779_s11, %s3482_s21  ;;  %p3488_p6 = scmp.lt.u32.totalorder %s3779_s11, %s4522_s0 }
  0x1e   : > { %p3489_p7 = scmp.lt.u32.totalorder %s3487_s25, %s3482_s21  ;;  %p3491_p13 = scmp.lt.u32.totalorder %s3482_s21, %s3779_s11 }
  0x1f   : > { %p3485_p4 = pnand %p3484_p3, %p3483_p2 }
  0x20   : > { %p3490_p10 = por %p3489_p7, %p3488_p6 }
  0x21   : > { %p3486_p5 = pneg %p3485_p4 }
  0x22   : > { %p3492_p12 = por %p3491_p13, %p3490_p10 }
  0x24   : > { %p3493_p1 = pnand %p3492_p12, %p3486_p5 }
  0x26   : > { %3496 = shalt.err (!%p3493_p1)
}
  0x27   : > { %s3497_s6 = scalar_lea.vmem %s3781_s13, 1536  ;;  %s3662_s9 = smov [#allocation3]  }
  0x28   : > { %p3498_p2 = scmp.ne.s32.totalorder %s3781_s13, %s3497_s6  ;;  %s3502_s10 = sshll.u32 %s3662_s9, 4  ;;  %s3503_s10 = int_to_ptr.vmem [resolvable:$false] %s3502_s10 }
  0x29   : > { %s3504_s12 = scalar_lea.vmem %s3503_s10, 3072  ;;  %p3505_p9 = scmp.lt.s32.totalorder %s3781_s13, %s3503_s10 }
  0x2a   : > { %p3500_p4 = pnand %p3498_p2, %p3484_p3  ;;  %p3506_p6 = scmp.lt.s32.totalorder %s3504_s12, %s3497_s6 }
  0x2c   : > { %p3501_p11 = pneg %p3500_p4  ;;  %p3507_p7 = por %p3506_p6, %p3505_p9 }
  0x2e   : > { %p3508_p10 = pnand %p3507_p7, %p3501_p11 }
  0x30   : > { %3511 = shalt.err (!%p3508_p10)
}
  0x31   : > { %s3663_s21 = smov 192   ;;  %s3664_s22 = smov 12  }
  0x32   : > { %3330 = dma.hbm_to_vmem [thread:$0]  (!%p3772_p0), %s3779_s11, 1536, %s3781_s13, %s208_s14, %s3663_s21, %s3663_s21, %s3664_s22  }
  0x33   : > { %p260_p12 = scmp.lt.s32.totalorder %s3660_s20, 3  ;;  %s3315_s24 = smul.u32 384, %s3766_s5 }
  0x34   : > { %p4534_p9 = scmp.ge.s32.totalorder %s3660_s20, 1  ;;  %s3316_s26 = smul.u32 6144, %s3656_s19 }
  0x35   : > { %s239_s10 = scalar_lea.vmem [#allocation6], %s3315_s24  ;;  %s236_s11 = scalar_lea.sflag [#allocation7], %s3766_s5 }
  0x36   : > { %p3816_p11 = pnand %p4534_p9, %p260_p12  ;;  %s3824_s9 = scalar_lea.hbm %s4523_s1, %s3316_s26 }
  0x37   : > { %s246_s12 = sshll.u32 %s239_s10, 4  ;;  %s3512_s13 = scalar_lea.hbm %s3824_s9, 6144  ;;  %s3826_s12 = int_to_ptr.vmem [resolvable:$true] %s246_s12 }
  0x38   : > { %p3513_p1 = scmp.ne.s32.totalorder %s3824_s9, %s3512_s13  ;;  %s3517_s22 = scalar_lea.hbm %s4523_s1, 12288 }
  0x39   : > { %p3518_p2 = scmp.lt.u32.totalorder %s3824_s9, %s4523_s1  ;;  %p3519_p4 = scmp.lt.u32.totalorder %s3517_s22, %s3512_s13 }
  0x3a   : > { %p3515_p5 = pnand %p3513_p1, %p3484_p3  ;;  %p3521_p7 = scmp.lt.u32.totalorder %s3512_s13, %s3824_s9 }
  0x3b   : > { %p3520_p6 = por %p3519_p4, %p3518_p2 }
  0x3c   : > { %p3516_p13 = pneg %p3515_p5 }
  0x3d   : > { %p3522_p10 = por %p3521_p7, %p3520_p6 }
  0x3f   : > { %p3523_p12 = pnand %p3522_p10, %p3516_p13 }
  0x41   : > { %3526 = shalt.err (!%p3523_p12)
}
  0x42   : > { %s3527_s24 = scalar_lea.vmem %s3826_s12, 6144  ;;  %s3665_s6 = smov [#allocation6]  }
  0x43   : > { %p3528_p9 = scmp.ne.s32.totalorder %s3826_s12, %s3527_s24  ;;  %s3532_s10 = sshll.u32 %s3665_s6, 4  ;;  %s3533_s10 = int_to_ptr.vmem [resolvable:$false] %s3532_s10 }
  0x44   : > { %s3534_s14 = scalar_lea.vmem %s3533_s10, 12288  ;;  %p3535_p8 = scmp.lt.s32.totalorder %s3826_s12, %s3533_s10 }
  0x45   : > { %p3530_p1 = pnand %p3528_p9, %p3484_p3  ;;  %p3536_p2 = scmp.lt.s32.totalorder %s3534_s14, %s3527_s24 }
  0x47   : > { %p3531_p5 = pneg %p3530_p1  ;;  %p3537_p4 = por %p3536_p2, %p3535_p8 }
  0x49   : > { %p3538_p6 = pnand %p3537_p4, %p3531_p5 }
  0x4b   : > { %3541 = shalt.err (!%p3538_p6)
}
  0x4c   : > { %s3666_s13 = smov 384   ;;  %s3667_s21 = smov 24  }
  0x4d   : > { %3333 = dma.hbm_to_vmem [thread:$0]  (!%p3772_p0), %s3824_s9, 6144, %s3826_s12, %s236_s11, %s3666_s13, %s3666_s13, %s3667_s21  }
  0x4e   : > { %264 = sbr.rel (%p3816_p11) target bundleno = 2235 (0x8bb), region = 32  ;;  %s3857_s22 = sand.u32 (!%p3816_p11), 1, %s3644_s16  }
  0x4f   : > { %s3317_s26 = smul.u32 (!%p3816_p11), 96, %s3857_s22  ;;  %s267_s7 = scalar_lea.sflag (!%p3816_p11), [#allocation4], %s3857_s22 }
  0x50   : > { %p4536_p8 = scmp.ne.s32.totalorder (!%p3816_p11), %s4530_s27, 0 }
  0x51   : > { %s3861_s24 = scalar_lea.vmem (!%p3816_p11), [#allocation3], %s3317_s26 }
  0x55   : > { %3623 = dma.done.wait (%p4536_p8), %s267_s7, 1536  }
  0x56   : > { %3625 = vsyncadd (%p4536_p8), %s267_s7, 4294965760  ;;  %s3318_s5 = smul.u32 384, %s3857_s22  ;;  %s276_s8 = scalar_lea.sflag [#allocation7], %s3857_s22 }
  0x58   : > { %s3869_s25 = scalar_lea.vmem [#allocation6], %s3318_s5 }
  0x59   : > { %3627 = dma.done.wait (%p4536_p8), %s276_s8, 6144  }
  0x5a   : > { %3629 = vsyncadd (%p4536_p8), %s276_s8, 4294961152  ;;  %v3668_v0 = vmov 0.0|0.0   ;;  %v3669_v1 = vmov 0.0   ;;  %vm3670_vm0 = vmmov 0   ;;  %v353_v2 = vld [vmem:[%s3869_s25 + $0x8] sm:$0xff]  ;;  %v356_v3 = vld [vmem:[%s3869_s25 + $0x20] sm:$0xff] }
  0x5b   : > { %2897 = vmatprep.subr.bf16.mxu1 %v3668_v0  ;;  %464 = vmatprep.mubr.f32.mxu0 %v3669_v1  ;;  %v352_v4 = vld [vmem:[%s3869_s25] sm:$0xff]  ;;  %v3882_v5 = vpack.c.bf16 %v356_v3, %v353_v2  ;;  %v355_v6 = vld [vmem:[%s3869_s25 + $0x18] sm:$0xff]  ;;  %v362_v8 = vld [vmem:[%s3869_s25 + $0x50] sm:$0xff]  ;;  %s2447_s27 = smul.u32 84, %s3652_s18  ;;  %p322_p0 = scmp.lt.s32.totalorder %s3652_s18, 1 }
  0x5c   : > { %2617 = vmatprep.mubr.msk.f32.mxu1 %vm3670_vm0, %v3669_v1  ;;  %v359_v7 = vld [vmem:[%s3869_s25 + $0x38] sm:$0xff]  ;;  %v3887_v9 = vpack.c.bf16 %v355_v6, %v352_v4  ;;  %v358_v11 = vld [vmem:[%s3869_s25 + $0x30] sm:$0xff]  ;;  %v361_v12 = vld [vmem:[%s3869_s25 + $0x48] sm:$0xff]  ;;  %s2388_s14 = sshll.u32 %s3857_s22, 6  ;;  %s2395_s13 = smul.u32 56, %s3652_s18 }
  0x5d   : > { %v3889_v10 = vpack.c.bf16 %v362_v8, %v359_v7  ;;  %v365_v13 = vld [vmem:[%s3869_s25 + $0x68] sm:$0xff]  ;;  %2866 = vmatprep.subr.bf16.mxu0 %v3882_v5  ;;  %v368_v14 = vld [vmem:[%s3869_s25 + $0x80] sm:$0xff]  ;;  %v3897_v15 = vpack.c.bf16 %v361_v12, %v358_v11  ;;  %v367_v18 = vld [vmem:[%s3869_s25 + $0x78] sm:$0xff]  ;;  %s346_s9 = scalar_lea.vmem %s3861_s24, %s2447_s27 [#allocation3]  ;;  %s4060_s21 = scalar_lea.vmem [#allocation8], %s2388_s14 }
  0x5e   : > { %2868 = vmatpush1.bf16.msra.mxu0 %v3887_v9  ;;  %v3900_v16 = vpack.c.bf16 %v368_v14, %v365_v13  ;;  %v364_v17 = vld [vmem:[%s3869_s25 + $0x60] sm:$0xff]  ;;  %v371_v19 = vld [vmem:[%s3869_s25 + $0x98] sm:$0xff]  ;;  %v374_v20 = vld [vmem:[%s3869_s25 + $0xb0] sm:$0xff]  ;;  %s323_s12 = scalar_select %p322_p0, %s3652_s18, 1 }
  0x5f   : > { %2870 = vmatprep.subr.bf16.mxu0 %v3889_v10  ;;  %v3907_v21 = vpack.c.bf16 %v367_v18, %v364_v17  ;;  %v370_v22 = vld [vmem:[%s3869_s25 + $0x90] sm:$0xff]  ;;  %v3911_v23 = vpack.c.bf16 %v374_v20, %v371_v19  ;;  %v373_v24 = vld [vmem:[%s3869_s25 + $0xa8] sm:$0xff]  ;;  %v380_v28 = vld [vmem:[%s3869_s25 + $0xe0] sm:$0xff]  ;;  %s564_s26 = scalar_lea.vmem %s4060_s21, %s2395_s13 [#allocation8]  ;;  %s2396_s7 = smul.u32 60, %s3652_s18 }
  0x60   : > { %v354_v25 = vld [vmem:[%s3869_s25 + $0x10] sm:$0xff]  ;;  %v357_v26 = vld [vmem:[%s3869_s25 + $0x28] sm:$0xff]  ;;  %v360_v30 = vld [vmem:[%s3869_s25 + $0x40] sm:$0xff]  ;;  %v3923_v32 = vpack.c.bf16 %v373_v24, %v370_v22  ;;  %s4052_s10 = scalar_lea.vmem %s4524_s2, %s323_s12  ;;  %s2401_s8 = smul.u32 40, %s3652_s18 }
  0x61   : > { %v377_v27 = vld [vmem:[%s3869_s25 + $0xc8] sm:$0xff]  ;;  %v3918_v29 = vpack.c.bf16 %v357_v26, %v354_v25  ;;  %v363_v31 = vld [vmem:[%s3869_s25 + $0x58] sm:$0xff]  ;;  %v376_v33 = vld [vmem:[%s3869_s25 + $0xc0] sm:$0xff]  ;;  %s2258_s5 = scalar_lea.vmem %s3861_s24, %s2396_s7 [#allocation3]  ;;  %s2408_s11 = smul.u32 24, %s3652_s18 }
  0x62   : > { %2872 = vmatpush1.bf16.msra.mxu0 %v3897_v15  ;;  %v3927_v34 = vpack.c.bf16 %v363_v31, %v360_v30  ;;  %v3930_v35 = vpack.c.bf16 %v380_v28, %v377_v27  ;;  %v379_v36 = vld [vmem:[%s3869_s25 + $0xd8] sm:$0xff]  ;;  %v366_v37 = vld [vmem:[%s3869_s25 + $0x70] sm:$0xff]  ;;  %v369_v38 = vld [vmem:[%s3869_s25 + $0x88] sm:$0xff]  ;;  %s2262_s27 = scalar_lea.vmem %s4060_s21, %s2401_s8 [#allocation8]  ;;  %s2414_s13 = sshll.u32 %s3652_s18, 3 }
  0x63   : > { %2874 = vmatprep.subr.bf16.mxu0 %v3900_v16  ;;  %2899 = vmatpush3.bf16.msra.mxu1 %v3918_v29  ;;  %v383_v39 = vld [vmem:[%s3869_s25 + $0xf8] sm:$0xff]  ;;  %v386_v40 = vld [vmem:[%s3869_s25 + $0x110] sm:$0xff]  ;;  %v3939_v41 = vpack.c.bf16 %v379_v36, %v376_v33  ;;  %v3943_v43 = vpack.c.bf16 %v369_v38, %v366_v37  ;;  %v385_v45 = vld [vmem:[%s3869_s25 + $0x108] sm:$0xff]  ;;  %s2270_s6 = scalar_lea.vmem %s4060_s21, %s2408_s11 [#allocation8]  ;;  %s1237_s7 = ssub.s32 4, %s3652_s18 }
  0x64   : > { %2900 = vmatprep.subr.bf16.mxu1 %v3668_v0  ;;  %v382_v42 = vld [vmem:[%s3869_s25 + $0xf0] sm:$0xff]  ;;  %v3946_v44 = vpack.c.bf16 %v386_v40, %v383_v39  ;;  %v372_v46 = vld [vmem:[%s3869_s25 + $0xa0] sm:$0xff]  ;;  %v375_v47 = vld [vmem:[%s3869_s25 + $0xb8] sm:$0xff]  ;;  %p4537_p11 = scmp.ne.s32.totalorder %s4531_s28, 0 }
  0x65   : > { %v389_v48 = vld [vmem:[%s3869_s25 + $0x128] sm:$0xff]  ;;  %v392_v49 = vld [vmem:[%s3869_s25 + $0x140] sm:$0xff]  ;;  %v3955_v50 = vpack.c.bf16 %v385_v45, %v382_v42  ;;  %v3959_v52 = vpack.c.bf16 %v375_v47, %v372_v46  ;;  %v391_v54 = vld [vmem:[%s3869_s25 + $0x138] sm:$0xff] }
  0x66   : > { %2876 = vmatpush1.bf16.msra.mxu0 %v3907_v21  ;;  %v388_v51 = vld [vmem:[%s3869_s25 + $0x120] sm:$0xff]  ;;  %v3962_v53 = vpack.c.bf16 %v392_v49, %v389_v48  ;;  %v378_v55 = vld [vmem:[%s3869_s25 + $0xd0] sm:$0xff]  ;;  %v381_v56 = vld [vmem:[%s3869_s25 + $0xe8] sm:$0xff] }
  0x67   : > { %2878 = vmatprep.subr.bf16.mxu0 %v3911_v23  ;;  %2902 = vmatpush3.bf16.msra.mxu1 %v3927_v34  ;;  %v395_v57 = vld [vmem:[%s3869_s25 + $0x158] sm:$0xff]  ;;  %v398_v58 = vld [vmem:[%s3869_s25 + $0x170] sm:$0xff]  ;;  %v3971_v59 = vpack.c.bf16 %v391_v54, %v388_v51  ;;  %v3975_v61 = vpack.c.bf16 %v381_v56, %v378_v55  ;;  %v397_v63 = vld [vmem:[%s3869_s25 + $0x168] sm:$0xff] }
  0x68   : > { %2903 = vmatprep.subr.bf16.mxu1 %v3668_v0  ;;  %v394_v60 = vld [vmem:[%s3869_s25 + $0x150] sm:$0xff]  ;;  %v3978_v62 = vpack.c.bf16 %v398_v58, %v395_v57  ;;  %v384_v2 = vld [vmem:[%s3869_s25 + $0x100] sm:$0xff]  ;;  %v387_v3 = vld [vmem:[%s3869_s25 + $0x118] sm:$0xff] }
  0x69   : > { %v3985_v4 = vpack.c.bf16 %v397_v63, %v394_v60  ;;  %v3988_v6 = vpack.c.bf16 %v387_v3, %v384_v2  ;;  %v390_v7 = vld [vmem:[%s3869_s25 + $0x130] sm:$0xff]  ;;  %v393_v8 = vld [vmem:[%s3869_s25 + $0x148] sm:$0xff]  ;;  %v396_v12 = vld [vmem:[%s3869_s25 + $0x160] sm:$0xff] }
  0x6a   : > { %2880 = vmatpush1.bf16.msra.mxu0 %v3923_v32  ;;  %v3996_v11 = vpack.c.bf16 %v393_v8, %v390_v7  ;;  %v399_v13 = vld [vmem:[%s3869_s25 + $0x178] sm:$0xff]  ;;  %v347_v17 = vld [vmem:[%s346_s9] sm:$0xff]  ;;  %v348_v38 = vld [vmem:[%s346_s9 + $0x8] sm:$0xf]  ;;  %s2403_s9 = smul.u32 36, %s3652_s18 }
  0x6b   : > { %2882 = vmatprep.subr.bf16.mxu0 %v3930_v35  ;;  %2905 = vmatpush3.bf16.msra.mxu1 %v3943_v43  ;;  %v4004_v14 = vpack.c.bf16 %v399_v13, %v396_v12  ;;  %v349_v18 = vunpack.c.l.bf16 %v347_v17  ;;  %v350_v20 = vunpack.c.h.bf16 %v347_v17  ;;  %v4055_v37 = vld [vmem:[%s4052_s10] ss:$0 sm:$0xff]  ;;  %v351_v42 = vunpack.c.l.bf16 %v348_v38  ;;  %v2397_v57 = vld [vmem:[%s2258_s5 + $0xc] sm:$0xff] }
  0x6c   : > { %2906 = vmatprep.subr.bf16.mxu1 %v3668_v0  ;;  %v573_v58 = vunpack.c.l.bf16 %v2397_v57  ;;  %v574_v2 = vunpack.c.h.bf16 %v2397_v57  ;;  %s2266_s12 = scalar_lea.vmem %s3861_s24, %s2403_s9 [#allocation3]  ;;  %v1251_v57 = vld [vmem:[%s3869_s25 + $0x28] sm:$0xff] }
  0x6e   : > { %2884 = vmatpush1.bf16.msra.mxu0 %v3939_v41 }
  0x6f   : > { %2886 = vmatprep.subr.bf16.mxu0 %v3946_v44  ;;  %2908 = vmatpush3.bf16.msra.mxu1 %v3959_v52 }
  0x70   : > { %2909 = vmatprep.subr.bf16.mxu1 %v3668_v0 }
  0x72   : > { %2888 = vmatpush1.bf16.msra.mxu0 %v3955_v50 }
  0x73   : > { %2890 = vmatprep.subr.bf16.mxu0 %v3962_v53  ;;  %2911 = vmatpush3.bf16.msra.mxu1 %v3975_v61 }
  0x74   : > { %2912 = vmatprep.subr.bf16.mxu1 %v3668_v0 }
  0x76   : > { %2892 = vmatpush1.bf16.msra.mxu0 %v3971_v59 }
  0x77   : > { %2894 = vmatprep.subr.bf16.mxu0 %v3978_v62  ;;  %2914 = vmatpush3.bf16.msra.mxu1 %v3988_v6 }
  0x78   : > { %2915 = vmatprep.subr.bf16.mxu1 %v3668_v0 }
  0x7a   : > { %2896 = vmatpush1.bf16.msra.mxu0 %v3985_v4 }
  0x7b   : > { %2922 = vmatprep.subr.bf16.mxu0 %v3882_v5  ;;  %2917 = vmatpush3.bf16.msra.mxu1 %v3996_v11 }
  0x7c   : > { %2918 = vmatprep.subr.bf16.mxu1 %v3668_v0 }
  0x7d   : > { %465 = vmatmul.mubr.f32.vlgmr.msra.gmra.mrb[0].mxu0 %v3669_v1 }
  0x7e   : > { %2924 = vmatpush1.bf16.msra.mxu0 %v3887_v9  ;;  %688 = vmatprep.mubr.f32.mxu0 %v3669_v1 }
  0x7f   : > { %2926 = vmatprep.subr.bf16.mxu0 %v3889_v10  ;;  %2920 = vmatpush3.bf16.msra.mxu1 %v4004_v14 }
  0x80   : > { %2953 = vmatprep.subr.bf16.mxu1 %v3668_v0 }
  0x82   : > { %2928 = vmatpush1.bf16.msra.mxu0 %v3897_v15  ;;  %2618 = vmatmul.mubr.f32.vlgmr.msra.gmra.mrb[0].mxu1 %v3669_v1 }
  0x83   : > { %2930 = vmatprep.subr.bf16.mxu0 %v3900_v16  ;;  %2955 = vmatpush3.bf16.msra.mxu1 %v3918_v29 }
  0x84   : > { %2956 = vmatprep.subr.bf16.mxu1 %v3668_v0  ;;  %2652 = vmatprep.mubr.msk.f32.mxu1 %vm3670_vm0, %v3669_v1 }
  0x86   : > { %2932 = vmatpush1.bf16.msra.mxu0 %v3907_v21 }
  0x87   : > { %2934 = vmatprep.subr.bf16.mxu0 %v3911_v23  ;;  %2958 = vmatpush3.bf16.msra.mxu1 %v3927_v34 }
  0x88   : > { %2959 = vmatprep.subr.bf16.mxu1 %v3668_v0 }
  0x8a   : > { %2936 = vmatpush1.bf16.msra.mxu0 %v3923_v32 }
  0x8b   : > { %2938 = vmatprep.subr.bf16.mxu0 %v3930_v35  ;;  %2961 = vmatpush3.bf16.msra.mxu1 %v3943_v43 }
  0x8c   : > { %2962 = vmatprep.subr.bf16.mxu1 %v3668_v0 }
  0x8e   : > { %2940 = vmatpush1.bf16.msra.mxu0 %v3939_v41 }
  0x8f   : > { %2942 = vmatprep.subr.bf16.mxu0 %v3946_v44  ;;  %2964 = vmatpush3.bf16.msra.mxu1 %v3959_v52 }
  0x90   : > { %2965 = vmatprep.subr.bf16.mxu1 %v3668_v0 }
  0x92   : > { %2944 = vmatpush1.bf16.msra.mxu0 %v3955_v50 }
  0x93   : > { %2946 = vmatprep.subr.bf16.mxu0 %v3962_v53  ;;  %2967 = vmatpush3.bf16.msra.mxu1 %v3975_v61 }
  0x94   : > { %2968 = vmatprep.subr.bf16.mxu1 %v3668_v0 }
  0x96   : > { %2948 = vmatpush1.bf16.msra.mxu0 %v3971_v59 }
  0x97   : > { %2950 = vmatprep.subr.bf16.mxu0 %v3978_v62  ;;  %2970 = vmatpush3.bf16.msra.mxu1 %v3988_v6 }
  0x98   : > { %2971 = vmatprep.subr.bf16.mxu1 %v3668_v0 }
  0x9a   : > { %2952 = vmatpush1.bf16.msra.mxu0 %v3985_v4 }
  0x9b   : > { %2978 = vmatprep.subr.bf16.mxu0 %v3882_v5  ;;  %2973 = vmatpush3.bf16.msra.mxu1 %v3996_v11 }
  0x9c   : > { %2974 = vmatprep.subr.bf16.mxu1 %v3668_v0 }
  0x9f   : > { %2976 = vmatpush3.bf16.msra.mxu1 %v4004_v14 }
  0xa0   : > { %3009 = vmatprep.subr.bf16.mxu1 %v3668_v0 }
 0x150   : > { %v466_v19 = vpop.f32.mrb[0].mxu0 }
 0x151   : > { %v541_v22 = vadd.f32 %v466_v19, %v349_v18  ;;  %v468_v24 = vpop.f32.mrb[1].mxu0 }
 0x152   : > { %v548_v26 = vadd.f32 %v468_v24, %v350_v20  ;;  %v2398_v20 = vld [vmem:[%s2258_s5 + $0x14] sm:$0xf]  ;;  %s2448_s5 = smul.u32 12, %s1237_s7 }
 0x153   : > { %v2393_v25 = vmul.f32 -1.442695, %v541_v22  ;;  %v575_v24 = vunpack.c.l.bf16 %v2398_v20  ;;  %v1258_v20 = vld [vmem:[%s3869_s25 + $0x60] sm:$0xff] }
 0x154   : > { %v2394_v27 = vmul.f32 -1.442695, %v548_v26  ;;  %s1240_s8 = scalar_lea.vmem %s3861_s24, %s2448_s5 [#allocation3] }
 0x155   : > { %3401 = vpow2.f32 %v2393_v25  ;;  %v537_v28 = vpop.f32.mrb[0].mxu1 }
 0x156   : > { %v2619_v30 = vpop.f32.mrb[1].mxu1  ;;  %3403 = vpow2.f32 %v2394_v27  ;;  %v555_v40 = vadd.f32 %v4055_v37, %v537_v28 }
 0x15f   : > { %v3402_v31 = vpop.eup %3401 }
 0x160   : > { %v545_v33 = vadd.f32 1.0, %v3402_v31  ;;  %v3404_v36 = vpop.eup %3403 }
 0x161   : > { %v552_v39 = vadd.f32 1.0, %v3404_v36 }
 0x162   : > { %3405 = vrcp.f32 %v545_v33 }
 0x163   : > { %3407 = vrcp.f32 %v552_v39 }
 0x16c   : > { %v3406_v45 = vpop.eup %3405 }
 0x16d   : > { %v556_v46 = vmul.f32 %v3406_v45, %v555_v40  ;;  %v3408_v48 = vpop.eup %3407 }
 0x16e   : > { %v559_v49 = vsub.f32 1.0, %v3408_v48  ;;  %v561_v55 = vmul.f32 0.0, %v3408_v48  ;;  %v1250_v48 = vld [vmem:[%s3869_s25 + $0x20] sm:$0xff] }
 0x16f   : > { %v557_v47 = vadd.f32 %v556_v46, %v351_v42 }
 0x171   : > { %3409 = vtanh.f32 %v557_v47  ;;  %v1247_v47 = vld [vmem:[%s3869_s25 + $0x8] sm:$0xff] }
 0x17b   : > { %v3410_v51 = vpop.eup %3409 }
 0x17c   : > { %v560_v54 = vmul.f32 %v3410_v51, %v559_v49  ;;  %v4164_v49 = vpack.c.bf16 %v1250_v48, %v1247_v47  ;;  %v1246_v51 = vld [vmem:[%s3869_s25] sm:$0xff]  ;;  %v1287_v47 = vld [vmem:[%s3869_s25 + $0x148] sm:$0xff] }
 0x17e   : > { %v4063_v56 = vadd.f32 %v561_v55, %v560_v54  ;;  %v1249_v54 = vld [vmem:[%s3869_s25 + $0x18] sm:$0xff]  ;;  %v1248_v55 = vld [vmem:[%s3869_s25 + $0x10] sm:$0xff] }
 0x180   : > { %565 = vst [vmem:[%s564_s26] sm:$0xff] %v4063_v56  ;;  %689 = vmatmul.mubr.f32.vlgmr.msra.gmra.mrb[2].mxu0 %v4063_v56  ;;  %2653 = vmatmul.mubr.f32.vlgmr.msra.gmra.mrb[2].mxu1 %v4063_v56  ;;  %s2276_s26 = scalar_lea.vmem %s4060_s21, %s2414_s13 [#allocation8] }
 0x181   : > { %2980 = vmatpush1.bf16.msra.mxu0 %v3887_v9  ;;  %3011 = vmatpush3.bf16.msra.mxu1 %v3918_v29 }
 0x182   : > { %2982 = vmatprep.subr.bf16.mxu0 %v3889_v10  ;;  %3012 = vmatprep.subr.bf16.mxu1 %v3668_v0 }
 0x183   : > { %912 = vmatprep.mubr.f32.mxu0 %v3669_v1  ;;  %2687 = vmatprep.mubr.msk.f32.mxu1 %vm3670_vm0, %v3669_v1 }
 0x185   : > { %2984 = vmatpush1.bf16.msra.mxu0 %v3897_v15  ;;  %3014 = vmatpush3.bf16.msra.mxu1 %v3927_v34 }
 0x186   : > { %2986 = vmatprep.subr.bf16.mxu0 %v3900_v16  ;;  %3015 = vmatprep.subr.bf16.mxu1 %v3668_v0 }
 0x189   : > { %2988 = vmatpush1.bf16.msra.mxu0 %v3907_v21  ;;  %3017 = vmatpush3.bf16.msra.mxu1 %v3943_v43 }
 0x18a   : > { %2990 = vmatprep.subr.bf16.mxu0 %v3911_v23  ;;  %3018 = vmatprep.subr.bf16.mxu1 %v3668_v0 }
 0x18d   : > { %2992 = vmatpush1.bf16.msra.mxu0 %v3923_v32  ;;  %3020 = vmatpush3.bf16.msra.mxu1 %v3959_v52 }
 0x18e   : > { %2994 = vmatprep.subr.bf16.mxu0 %v3930_v35  ;;  %3021 = vmatprep.subr.bf16.mxu1 %v3668_v0 }
 0x191   : > { %2996 = vmatpush1.bf16.msra.mxu0 %v3939_v41  ;;  %3023 = vmatpush3.bf16.msra.mxu1 %v3975_v61 }
 0x192   : > { %2998 = vmatprep.subr.bf16.mxu0 %v3946_v44  ;;  %3024 = vmatprep.subr.bf16.mxu1 %v3668_v0 }
 0x195   : > { %3000 = vmatpush1.bf16.msra.mxu0 %v3955_v50  ;;  %3026 = vmatpush3.bf16.msra.mxu1 %v3988_v6 }
 0x196   : > { %3002 = vmatprep.subr.bf16.mxu0 %v3962_v53  ;;  %3027 = vmatprep.subr.bf16.mxu1 %v3668_v0 }
 0x199   : > { %3004 = vmatpush1.bf16.msra.mxu0 %v3971_v59  ;;  %3029 = vmatpush3.bf16.msra.mxu1 %v3996_v11 }
 0x19a   : > { %3006 = vmatprep.subr.bf16.mxu0 %v3978_v62  ;;  %3030 = vmatprep.subr.bf16.mxu1 %v3668_v0 }
 0x19d   : > { %3008 = vmatpush1.bf16.msra.mxu0 %v3985_v4  ;;  %3032 = vmatpush3.bf16.msra.mxu1 %v4004_v14 }
 0x19e   : > { %3034 = vmatprep.subr.bf16.mxu0 %v3882_v5  ;;  %3065 = vmatprep.subr.bf16.mxu1 %v3668_v0 }
 0x253   : > { %v690_v60 = vpop.f32.mrb[2].mxu0  ;;  %v761_v63 = vpop.f32.mrb[2].mxu1 }
 0x254   : > { %v765_v3 = vadd.f32 %v690_v60, %v573_v58  ;;  %v692_v7 = vpop.f32.mrb[3].mxu0  ;;  %v2654_v8 = vpop.f32.mrb[3].mxu1  ;;  %v779_v25 = vadd.f32 %v4055_v37, %v761_v63  ;;  %v4173_v58 = vpack.c.bf16 %v1251_v57, %v1248_v55  ;;  %v1253_v60 = vld [vmem:[%s3869_s25 + $0x38] sm:$0xff]  ;;  %v1256_v63 = vld [vmem:[%s3869_s25 + $0x50] sm:$0xff] }
 0x255   : > { %v772_v13 = vadd.f32 %v692_v7, %v574_v2  ;;  %v4179_v2 = vpack.c.bf16 %v1256_v63, %v1253_v60  ;;  %v1255_v7 = vld [vmem:[%s3869_s25 + $0x48] sm:$0xff]  ;;  %v1254_v8 = vld [vmem:[%s3869_s25 + $0x40] sm:$0xff]  ;;  %v1288_v60 = vld [vmem:[%s3869_s25 + $0x150] sm:$0xff] }
 0x256   : > { %v2399_v12 = vmul.f32 -1.442695, %v765_v3  ;;  %v1252_v3 = vld [vmem:[%s3869_s25 + $0x30] sm:$0xff]  ;;  %v1291_v63 = vld [vmem:[%s3869_s25 + $0x168] sm:$0xff] }
 0x257   : > { %v2400_v17 = vmul.f32 -1.442695, %v772_v13  ;;  %v1257_v13 = vld [vmem:[%s3869_s25 + $0x58] sm:$0xff] }
 0x258   : > { %3411 = vpow2.f32 %v2399_v12  ;;  %v4185_v12 = vpack.c.bf16 %v1255_v7, %v1252_v3  ;;  %v1290_v3 = vld [vmem:[%s3869_s25 + $0x160] sm:$0xff]  ;;  %v1293_v7 = vld [vmem:[%s3869_s25 + $0x178] sm:$0xff] }
 0x259   : > { %3413 = vpow2.f32 %v2400_v17  ;;  %v4189_v17 = vpack.c.bf16 %v1257_v13, %v1254_v8  ;;  %v4280_v8 = vpack.c.bf16 %v1291_v63, %v1288_v60  ;;  %v4284_v13 = vpack.c.bf16 %v1293_v7, %v1290_v3 }
 0x262   : > { %v3412_v18 = vpop.eup %3411 }
 0x263   : > { %v769_v5 = vadd.f32 1.0, %v3412_v18  ;;  %v3414_v19 = vpop.eup %3413  ;;  %v1259_v18 = vld [vmem:[%s3869_s25 + $0x68] sm:$0xff] }
 0x264   : > { %v776_v22 = vadd.f32 1.0, %v3414_v19 }
 0x265   : > { %3415 = vrcp.f32 %v769_v5  ;;  %v1262_v5 = vld [vmem:[%s3869_s25 + $0x80] sm:$0xff] }
 0x266   : > { %3417 = vrcp.f32 %v776_v22  ;;  %v4195_v19 = vpack.c.bf16 %v1262_v5, %v1259_v18  ;;  %v1261_v22 = vld [vmem:[%s3869_s25 + $0x78] sm:$0xff] }
 0x26f   : > { %v3416_v26 = vpop.eup %3415 }
 0x270   : > { %v780_v27 = vmul.f32 %v3416_v26, %v779_v25  ;;  %v3418_v30 = vpop.eup %3417  ;;  %v4201_v25 = vpack.c.bf16 %v1261_v22, %v1258_v20  ;;  %v1263_v26 = vld [vmem:[%s3869_s25 + $0x88] sm:$0xff] }
 0x271   : > { %v783_v31 = vsub.f32 1.0, %v3418_v30  ;;  %v785_v38 = vmul.f32 %v3418_v30, %v4063_v56  ;;  %v4169_v56 = vpack.c.bf16 %v1249_v54, %v1246_v51  ;;  %v1268_v30 = vld [vmem:[%s3869_s25 + $0xb0] sm:$0xff]  ;;  %v1289_v51 = vld [vmem:[%s3869_s25 + $0x158] sm:$0xff] }
 0x272   : > { %v781_v28 = vadd.f32 %v780_v27, %v575_v24  ;;  %v1260_v24 = vld [vmem:[%s3869_s25 + $0x70] sm:$0xff] }
 0x273   : > { %v4205_v27 = vpack.c.bf16 %v1263_v26, %v1260_v24  ;;  %v1292_v54 = vld [vmem:[%s3869_s25 + $0x170] sm:$0xff] }
 0x274   : > { %3419 = vtanh.f32 %v781_v28  ;;  %v1265_v28 = vld [vmem:[%s3869_s25 + $0x98] sm:$0xff]  ;;  %v4272_v57 = vpack.c.bf16 %v1292_v54, %v1289_v51 }
 0x27e   : > { %v3420_v33 = vpop.eup %3419 }
 0x27f   : > { %v784_v36 = vmul.f32 %v3420_v33, %v783_v31  ;;  %v4211_v31 = vpack.c.bf16 %v1268_v30, %v1265_v28  ;;  %v1264_v33 = vld [vmem:[%s3869_s25 + $0x90] sm:$0xff] }
 0x281   : > { %v4109_v39 = vadd.f32 %v785_v38, %v784_v36  ;;  %v1267_v36 = vld [vmem:[%s3869_s25 + $0xa8] sm:$0xff]  ;;  %v1266_v38 = vld [vmem:[%s3869_s25 + $0xa0] sm:$0xff] }
 0x283   : > { %2402 = vst [vmem:[%s2262_s27 + $0x8] sm:$0xff] %v4109_v39  ;;  %913 = vmatmul.mubr.f32.vlgmr.msra.gmra.mrb[4].mxu0 %v4109_v39  ;;  %2688 = vmatmul.mubr.f32.vlgmr.msra.gmra.mrb[4].mxu1 %v4109_v39  ;;  %s2419_s27 = sshll.u32 %s1237_s7, 3 }
 0x284   : > { %3036 = vmatpush1.bf16.msra.mxu0 %v3887_v9  ;;  %3067 = vmatpush3.bf16.msra.mxu1 %v3918_v29  ;;  %v2404_v9 = vld [vmem:[%s2266_s12 + $0x18] sm:$0xff]  ;;  %s1458_s9 = scalar_lea.vmem %s4060_s21, %s2419_s27 [#allocation8]  ;;  %s2443_s27 = sshll.u32 %s3652_s18, 7 }
 0x285   : > { %3038 = vmatprep.subr.bf16.mxu0 %v3889_v10  ;;  %3068 = vmatprep.subr.bf16.mxu1 %v3668_v0  ;;  %v797_v10 = vunpack.c.l.bf16 %v2404_v9 }
 0x286   : > { %1135 = vmatprep.mubr.f32.mxu0 %v3669_v1  ;;  %2722 = vmatprep.mubr.msk.f32.mxu1 %vm3670_vm0, %v3669_v1 }
 0x288   : > { %3040 = vmatpush1.bf16.msra.mxu0 %v3897_v15  ;;  %3070 = vmatpush3.bf16.msra.mxu1 %v3927_v34 }
 0x289   : > { %3042 = vmatprep.subr.bf16.mxu0 %v3900_v16  ;;  %3071 = vmatprep.subr.bf16.mxu1 %v3668_v0 }
 0x28c   : > { %3044 = vmatpush1.bf16.msra.mxu0 %v3907_v21  ;;  %3073 = vmatpush3.bf16.msra.mxu1 %v3943_v43  ;;  %v798_v21 = vunpack.c.h.bf16 %v2404_v9  ;;  %v1269_v9 = vld [vmem:[%s3869_s25 + $0xb8] sm:$0xff] }
 0x28d   : > { %3046 = vmatprep.subr.bf16.mxu0 %v3911_v23  ;;  %3074 = vmatprep.subr.bf16.mxu1 %v3668_v0 }
 0x290   : > { %3048 = vmatpush1.bf16.msra.mxu0 %v3923_v32  ;;  %3076 = vmatpush3.bf16.msra.mxu1 %v3959_v52  ;;  %v2405_v52 = vld [vmem:[%s2266_s12 + $0x20] sm:$0xf]  ;;  %s2420_s12 = smul.u32 4294967260, %s3652_s18 }
 0x291   : > { %3050 = vmatprep.subr.bf16.mxu0 %v3930_v35  ;;  %3077 = vmatprep.subr.bf16.mxu1 %v3668_v0 }
 0x292   : > { %s2284_s11 = scalar_lea.vmem %s3861_s24, %s2420_s12 [#allocation3] }
 0x294   : > { %3052 = vmatpush1.bf16.msra.mxu0 %v3939_v41  ;;  %3079 = vmatpush3.bf16.msra.mxu1 %v3975_v61 }
 0x295   : > { %3054 = vmatprep.subr.bf16.mxu0 %v3946_v44  ;;  %3080 = vmatprep.subr.bf16.mxu1 %v3668_v0 }
 0x298   : > { %3056 = vmatpush1.bf16.msra.mxu0 %v3955_v50  ;;  %3082 = vmatpush3.bf16.msra.mxu1 %v3988_v6 }
 0x299   : > { %3058 = vmatprep.subr.bf16.mxu0 %v3962_v53  ;;  %3083 = vmatprep.subr.bf16.mxu1 %v3668_v0 }
 0x29c   : > { %3060 = vmatpush1.bf16.msra.mxu0 %v3971_v59  ;;  %3085 = vmatpush3.bf16.msra.mxu1 %v3996_v11  ;;  %v799_v59 = vunpack.c.l.bf16 %v2405_v52 }
 0x29d   : > { %3062 = vmatprep.subr.bf16.mxu0 %v3978_v62  ;;  %3086 = vmatprep.subr.bf16.mxu1 %v3668_v0 }
 0x2a0   : > { %3064 = vmatpush1.bf16.msra.mxu0 %v3985_v4  ;;  %3088 = vmatpush3.bf16.msra.mxu1 %v4004_v14 }
 0x2a1   : > { %3121 = vmatprep.subr.bf16.mxu1 %v3668_v0  ;;  %3090 = vmatprep.subr.bf16.mxu0 %v4164_v49 }
 0x356   : > { %v914_v15 = vpop.f32.mrb[4].mxu0  ;;  %v985_v16 = vpop.f32.mrb[4].mxu1 }
 0x357   : > { %v989_v23 = vadd.f32 %v914_v15, %v797_v10  ;;  %v916_v29 = vpop.f32.mrb[5].mxu0  ;;  %v2689_v32 = vpop.f32.mrb[5].mxu1  ;;  %v1003_v61 = vadd.f32 %v4055_v37, %v985_v16  ;;  %v4221_v10 = vpack.c.bf16 %v1269_v9, %v1266_v38  ;;  %v1271_v15 = vld [vmem:[%s3869_s25 + $0xc8] sm:$0xff]  ;;  %v1274_v16 = vld [vmem:[%s3869_s25 + $0xe0] sm:$0xff] }
 0x358   : > { %v996_v35 = vadd.f32 %v916_v29, %v798_v21  ;;  %v4227_v21 = vpack.c.bf16 %v1274_v16, %v1271_v15  ;;  %v1273_v29 = vld [vmem:[%s3869_s25 + $0xd8] sm:$0xff]  ;;  %v1272_v32 = vld [vmem:[%s3869_s25 + $0xd0] sm:$0xff] }
 0x359   : > { %v2406_v34 = vmul.f32 -1.442695, %v989_v23  ;;  %v1270_v23 = vld [vmem:[%s3869_s25 + $0xc0] sm:$0xff] }
 0x35a   : > { %v2407_v41 = vmul.f32 -1.442695, %v996_v35  ;;  %v1275_v35 = vld [vmem:[%s3869_s25 + $0xe8] sm:$0xff] }
 0x35b   : > { %3421 = vpow2.f32 %v2406_v34  ;;  %v4233_v34 = vpack.c.bf16 %v1273_v29, %v1270_v23 }
 0x35c   : > { %3423 = vpow2.f32 %v2407_v41  ;;  %v4237_v41 = vpack.c.bf16 %v1275_v35, %v1272_v32 }
 0x365   : > { %v3422_v43 = vpop.eup %3421 }
 0x366   : > { %v993_v44 = vadd.f32 1.0, %v3422_v43  ;;  %v3424_v50 = vpop.eup %3423  ;;  %v1277_v43 = vld [vmem:[%s3869_s25 + $0xf8] sm:$0xff] }
 0x367   : > { %v1000_v53 = vadd.f32 1.0, %v3424_v50  ;;  %v1276_v50 = vld [vmem:[%s3869_s25 + $0xf0] sm:$0xff] }
 0x368   : > { %3425 = vrcp.f32 %v993_v44  ;;  %v1280_v44 = vld [vmem:[%s3869_s25 + $0x110] sm:$0xff] }
 0x369   : > { %3427 = vrcp.f32 %v1000_v53  ;;  %v4244_v52 = vpack.c.bf16 %v1280_v44, %v1277_v43  ;;  %v1279_v53 = vld [vmem:[%s3869_s25 + $0x108] sm:$0xff] }
 0x372   : > { %v3426_v62 = vpop.eup %3425 }
 0x373   : > { %v1004_v4 = vmul.f32 %v3426_v62, %v1003_v61  ;;  %v3428_v11 = vpop.eup %3427  ;;  %v1281_v61 = vld [vmem:[%s3869_s25 + $0x118] sm:$0xff]  ;;  %v4250_v62 = vpack.c.bf16 %v1279_v53, %v1276_v50 }
 0x374   : > { %v1007_v14 = vsub.f32 1.0, %v3428_v11  ;;  %v1009_v45 = vmul.f32 %v3428_v11, %v4109_v39  ;;  %v4217_v39 = vpack.c.bf16 %v1267_v36, %v1264_v33  ;;  %v1286_v11 = vld [vmem:[%s3869_s25 + $0x140] sm:$0xff] }
 0x375   : > { %v1005_v6 = vadd.f32 %v1004_v4, %v799_v59  ;;  %v1278_v59 = vld [vmem:[%s3869_s25 + $0x100] sm:$0xff] }
 0x376   : > { %v4252_v4 = vpack.c.bf16 %v1281_v61, %v1278_v59 }
 0x377   : > { %3429 = vtanh.f32 %v1005_v6  ;;  %v1283_v6 = vld [vmem:[%s3869_s25 + $0x128] sm:$0xff] }
 0x381   : > { %v3430_v40 = vpop.eup %3429 }
 0x382   : > { %v1008_v42 = vmul.f32 %v3430_v40, %v1007_v14  ;;  %v1282_v14 = vld [vmem:[%s3869_s25 + $0x120] sm:$0xff]  ;;  %v4258_v40 = vpack.c.bf16 %v1286_v11, %v1283_v6 }
 0x384   : > { %v4154_v46 = vadd.f32 %v1009_v45, %v1008_v42  ;;  %v1285_v42 = vld [vmem:[%s3869_s25 + $0x138] sm:$0xff]  ;;  %v1284_v45 = vld [vmem:[%s3869_s25 + $0x130] sm:$0xff]  ;;  %s2272_s25 = smul.u32 12, %s3652_s18 }
 0x385   : > { %v4264_v48 = vpack.c.bf16 %v1285_v42, %v1282_v14  ;;  %v4270_v55 = vpack.c.bf16 %v1287_v47, %v1284_v45 }
 0x386   : > { %2409 = vst [vmem:[%s2270_s6 + $0x10] sm:$0xff] %v4154_v46  ;;  %1136 = vmatmul.mubr.f32.vlgmr.msra.gmra.mrb[6].mxu0 %v4154_v46  ;;  %2723 = vmatmul.mubr.f32.vlgmr.msra.gmra.mrb[6].mxu1 %v4154_v46  ;;  %s2273_s14 = scalar_lea.vmem %s3861_s24, %s2272_s25 [#allocation3]  ;;  %s2425_s6 = smul.u32 4294967272, %s3652_s18 }
 0x387   : > { %1358 = vmatprep.mubr.f32.mxu0 %v3669_v1  ;;  %2757 = vmatprep.mubr.msk.f32.mxu1 %vm3670_vm0, %v3669_v1  ;;  %v2410_v18 = vld [vmem:[%s2273_s14 + $0x24] sm:$0xff]  ;;  %v2411_v23 = vld [vmem:[%s2273_s14 + $0x2c] sm:$0xf]  ;;  %s2427_s14 = smul.u32 4294967236, %s3652_s18 }
 0x388   : > { %3092 = vmatpush1.bf16.msra.mxu0 %v4169_v56  ;;  %3123 = vmatpush3.bf16.msra.mxu1 %v4173_v58  ;;  %v1020_v5 = vunpack.c.l.bf16 %v2410_v18  ;;  %v1021_v24 = vunpack.c.h.bf16 %v2410_v18  ;;  %v1022_v32 = vunpack.c.l.bf16 %v2411_v23  ;;  %s2288_s25 = scalar_lea.vmem %s4060_s21, %s2425_s6 [#allocation8] }
 0x389   : > { %3124 = vmatprep.subr.bf16.mxu1 %v3668_v0  ;;  %3094 = vmatprep.subr.bf16.mxu0 %v4179_v2  ;;  %s2292_s13 = scalar_lea.vmem %s3861_s24, %s2427_s14 [#allocation3] }
 0x38c   : > { %3096 = vmatpush1.bf16.msra.mxu0 %v4185_v12  ;;  %3126 = vmatpush3.bf16.msra.mxu1 %v4189_v17 }
 0x38d   : > { %3127 = vmatprep.subr.bf16.mxu1 %v3668_v0  ;;  %3098 = vmatprep.subr.bf16.mxu0 %v4195_v19 }
 0x390   : > { %3100 = vmatpush1.bf16.msra.mxu0 %v4201_v25  ;;  %3129 = vmatpush3.bf16.msra.mxu1 %v4205_v27 }
 0x391   : > { %3130 = vmatprep.subr.bf16.mxu1 %v3668_v0  ;;  %3102 = vmatprep.subr.bf16.mxu0 %v4211_v31 }
 0x394   : > { %3104 = vmatpush1.bf16.msra.mxu0 %v4217_v39  ;;  %3132 = vmatpush3.bf16.msra.mxu1 %v4221_v10 }
 0x395   : > { %3133 = vmatprep.subr.bf16.mxu1 %v3668_v0  ;;  %3106 = vmatprep.subr.bf16.mxu0 %v4227_v21 }
 0x398   : > { %3108 = vmatpush1.bf16.msra.mxu0 %v4233_v34  ;;  %3135 = vmatpush3.bf16.msra.mxu1 %v4237_v41 }
 0x399   : > { %3136 = vmatprep.subr.bf16.mxu1 %v3668_v0  ;;  %3110 = vmatprep.subr.bf16.mxu0 %v4244_v52 }
 0x39c   : > { %3112 = vmatpush1.bf16.msra.mxu0 %v4250_v62  ;;  %3138 = vmatpush3.bf16.msra.mxu1 %v4252_v4 }
 0x39d   : > { %3114 = vmatprep.subr.bf16.mxu0 %v4258_v40  ;;  %3139 = vmatprep.subr.bf16.mxu1 %v3668_v0 }
 0x3a0   : > { %3116 = vmatpush1.bf16.msra.mxu0 %v4264_v48  ;;  %3141 = vmatpush3.bf16.msra.mxu1 %v4270_v55 }
 0x3a1   : > { %3118 = vmatprep.subr.bf16.mxu0 %v4272_v57  ;;  %3142 = vmatprep.subr.bf16.mxu1 %v3668_v0 }
 0x3a4   : > { %3120 = vmatpush1.bf16.msra.mxu0 %v4280_v8  ;;  %3144 = vmatpush3.bf16.msra.mxu1 %v4284_v13 }
 0x3a5   : > { %3146 = vmatprep.subr.bf16.mxu0 %v4164_v49  ;;  %3177 = vmatprep.subr.bf16.mxu1 %v3668_v0 }
 0x459   : > { %v1137_v20 = vpop.f32.mrb[6].mxu0  ;;  %v1208_v22 = vpop.f32.mrb[6].mxu1 }
 0x45a   : > { %v1212_v26 = vadd.f32 %v1137_v20, %v1020_v5  ;;  %v1139_v28 = vpop.f32.mrb[7].mxu0  ;;  %v2724_v30 = vpop.f32.mrb[7].mxu1  ;;  %v1226_v35 = vadd.f32 %v4055_v37, %v1208_v22 }
 0x45b   : > { %v1219_v36 = vadd.f32 %v1139_v28, %v1021_v24  ;;  %v1242_v24 = vld [vmem:[%s1240_s8 + $0x8] sm:$0xf] }
 0x45c   : > { %v2412_v33 = vmul.f32 -1.442695, %v1212_v26  ;;  %v1245_v28 = vunpack.c.l.bf16 %v1242_v24 }
 0x45d   : > { %v2413_v38 = vmul.f32 -1.442695, %v1219_v36 }
 0x45e   : > { %3431 = vpow2.f32 %v2412_v33 }
 0x45f   : > { %3433 = vpow2.f32 %v2413_v38 }
 0x468   : > { %v3432_v9 = vpop.eup %3431 }
 0x469   : > { %v1216_v15 = vadd.f32 1.0, %v3432_v9  ;;  %v3434_v16 = vpop.eup %3433 }
 0x46a   : > { %v1223_v29 = vadd.f32 1.0, %v3434_v16 }
 0x46b   : > { %3435 = vrcp.f32 %v1216_v15 }
 0x46c   : > { %3437 = vrcp.f32 %v1223_v29 }
 0x475   : > { %v3436_v43 = vpop.eup %3435 }
 0x476   : > { %v1227_v44 = vmul.f32 %v3436_v43, %v1226_v35  ;;  %v3438_v53 = vpop.eup %3437  ;;  %v2421_v35 = vld [vmem:[%s2284_s11 + $0x3c] sm:$0xff] }
 0x477   : > { %v1230_v59 = vsub.f32 1.0, %v3438_v53  ;;  %v1232_v11 = vmul.f32 %v3438_v53, %v4154_v46  ;;  %v1241_v46 = vld [vmem:[%s1240_s8] sm:$0xff]  ;;  %v1467_v43 = vunpack.c.l.bf16 %v2421_v35  ;;  %v1468_v53 = vunpack.c.h.bf16 %v2421_v35  ;;  %s2389_s8 = sshll.u32 %s3857_s22, 3 }
 0x478   : > { %v1228_v50 = vadd.f32 %v1227_v44, %v1022_v32  ;;  %v1243_v42 = vunpack.c.l.bf16 %v1241_v46  ;;  %v1244_v51 = vunpack.c.h.bf16 %v1241_v46  ;;  %s316_s14 = scalar_lea.vmem [#allocation9], %s2389_s8 }
 0x47a   : > { %3439 = vtanh.f32 %v1228_v50 }
 0x484   : > { %v3440_v61 = vpop.eup %3439 }
 0x485   : > { %v1231_v6 = vmul.f32 %v3440_v61, %v1230_v59 }
 0x487   : > { %v4297_v14 = vadd.f32 %v1232_v11, %v1231_v6 }
 0x489   : > { %2415 = vst [vmem:[%s2276_s26 + $0x18] sm:$0xff] %v4297_v14  ;;  %1359 = vmatmul.mubr.f32.vlgmr.msra.gmra.mrb[8].mxu0 %v4297_v14  ;;  %2758 = vmatmul.mubr.f32.vlgmr.msra.gmra.mrb[8].mxu1 %v4297_v14  ;;  %s2432_s26 = smul.u32 4294967256, %s3652_s18 }
 0x48a   : > { %3148 = vmatpush1.bf16.msra.mxu0 %v4169_v56  ;;  %3179 = vmatpush3.bf16.msra.mxu1 %v4173_v58 }
 0x48b   : > { %3150 = vmatprep.subr.bf16.mxu0 %v4179_v2  ;;  %3180 = vmatprep.subr.bf16.mxu1 %v3668_v0  ;;  %s2296_s7 = scalar_lea.vmem %s4060_s21, %s2432_s26 [#allocation8]  ;;  %s4449_s26 = scalar_lea.hbm %s4526_s4, %s2443_s27 }
 0x48c   : > { %1582 = vmatprep.mubr.f32.mxu0 %v3669_v1  ;;  %2792 = vmatprep.mubr.msk.f32.mxu1 %vm3670_vm0, %v3669_v1 }
 0x48e   : > { %3152 = vmatpush1.bf16.msra.mxu0 %v4185_v12  ;;  %3182 = vmatpush3.bf16.msra.mxu1 %v4189_v17 }
 0x48f   : > { %3154 = vmatprep.subr.bf16.mxu0 %v4195_v19  ;;  %3183 = vmatprep.subr.bf16.mxu1 %v3668_v0 }
 0x492   : > { %3156 = vmatpush1.bf16.msra.mxu0 %v4201_v25  ;;  %3185 = vmatpush3.bf16.msra.mxu1 %v4205_v27 }
 0x493   : > { %3158 = vmatprep.subr.bf16.mxu0 %v4211_v31  ;;  %3186 = vmatprep.subr.bf16.mxu1 %v3668_v0 }
 0x496   : > { %3160 = vmatpush1.bf16.msra.mxu0 %v4217_v39  ;;  %3188 = vmatpush3.bf16.msra.mxu1 %v4221_v10 }
 0x497   : > { %3162 = vmatprep.subr.bf16.mxu0 %v4227_v21  ;;  %3189 = vmatprep.subr.bf16.mxu1 %v3668_v0 }
 0x49a   : > { %3164 = vmatpush1.bf16.msra.mxu0 %v4233_v34  ;;  %3191 = vmatpush3.bf16.msra.mxu1 %v4237_v41 }
 0x49b   : > { %3166 = vmatprep.subr.bf16.mxu0 %v4244_v52  ;;  %3192 = vmatprep.subr.bf16.mxu1 %v3668_v0 }
 0x49e   : > { %3168 = vmatpush1.bf16.msra.mxu0 %v4250_v62  ;;  %3194 = vmatpush3.bf16.msra.mxu1 %v4252_v4 }
 0x49f   : > { %3170 = vmatprep.subr.bf16.mxu0 %v4258_v40  ;;  %3195 = vmatprep.subr.bf16.mxu1 %v3668_v0 }
 0x4a2   : > { %3172 = vmatpush1.bf16.msra.mxu0 %v4264_v48  ;;  %3197 = vmatpush3.bf16.msra.mxu1 %v4270_v55 }
 0x4a3   : > { %3174 = vmatprep.subr.bf16.mxu0 %v4272_v57  ;;  %3198 = vmatprep.subr.bf16.mxu1 %v3668_v0 }
 0x4a6   : > { %3176 = vmatpush1.bf16.msra.mxu0 %v4280_v8  ;;  %3200 = vmatpush3.bf16.msra.mxu1 %v4284_v13 }
 0x4a7   : > { %3202 = vmatprep.subr.bf16.mxu0 %v4164_v49  ;;  %3233 = vmatprep.subr.bf16.mxu1 %v3668_v0 }
 0x55c   : > { %v1360_v45 = vpop.f32.mrb[8].mxu0  ;;  %v1431_v47 = vpop.f32.mrb[8].mxu1 }
 0x55d   : > { %v1435_v54 = vadd.f32 %v1360_v45, %v1243_v42  ;;  %v1362_v60 = vpop.f32.mrb[9].mxu0  ;;  %v2759_v63 = vpop.f32.mrb[9].mxu1  ;;  %v1449_v30 = vadd.f32 %v4055_v37, %v1431_v47  ;;  %v2422_v47 = vld [vmem:[%s2284_s11 + $0x44] sm:$0xf] }
 0x55e   : > { %v1442_v7 = vadd.f32 %v1362_v60, %v1244_v51 }
 0x55f   : > { %v2417_v3 = vmul.f32 -1.442695, %v1435_v54  ;;  %v1469_v54 = vunpack.c.l.bf16 %v2422_v47 }
 0x560   : > { %v2418_v18 = vmul.f32 -1.442695, %v1442_v7 }
 0x561   : > { %3441 = vpow2.f32 %v2417_v3 }
 0x562   : > { %3443 = vpow2.f32 %v2418_v18 }
 0x56b   : > { %v3442_v5 = vpop.eup %3441 }
 0x56c   : > { %v1439_v20 = vadd.f32 1.0, %v3442_v5  ;;  %v3444_v22 = vpop.eup %3443 }
 0x56d   : > { %v1446_v26 = vadd.f32 1.0, %v3444_v22 }
 0x56e   : > { %3445 = vrcp.f32 %v1439_v20 }
 0x56f   : > { %3447 = vrcp.f32 %v1446_v26 }
 0x578   : > { %v3446_v33 = vpop.eup %3445 }
 0x579   : > { %v1450_v36 = vmul.f32 %v3446_v33, %v1449_v30  ;;  %v3448_v9 = vpop.eup %3447 }
 0x57a   : > { %v1453_v15 = vsub.f32 1.0, %v3448_v9  ;;  %v1455_v29 = vmul.f32 %v3448_v9, %v4297_v14 }
 0x57b   : > { %v1451_v38 = vadd.f32 %v1450_v36, %v1245_v28 }
 0x57d   : > { %3449 = vtanh.f32 %v1451_v38 }
 0x587   : > { %v3450_v16 = vpop.eup %3449 }
 0x588   : > { %v1454_v23 = vmul.f32 %v3450_v16, %v1453_v15 }
 0x58a   : > { %v4342_v32 = vadd.f32 %v1455_v29, %v1454_v23 }
 0x58c   : > { %1459 = vst [vmem:[%s1458_s9] sm:$0xff] %v4342_v32  ;;  %1583 = vmatmul.mubr.f32.vlgmr.msra.gmra.mrb[10].mxu0 %v4342_v32  ;;  %2793 = vmatmul.mubr.f32.vlgmr.msra.gmra.mrb[10].mxu1 %v4342_v32  ;;  %s2162_s9 = sshll.u32 %s4060_s21, 4  ;;  %s4444_s9 = int_to_ptr.vmem [resolvable:$true] %s2162_s9 }
 0x58d   : > { %3204 = vmatpush1.bf16.msra.mxu0 %v4169_v56  ;;  %3235 = vmatpush3.bf16.msra.mxu1 %v4173_v58 }
 0x58e   : > { %3206 = vmatprep.subr.bf16.mxu0 %v4179_v2  ;;  %3236 = vmatprep.subr.bf16.mxu1 %v3668_v0 }
 0x58f   : > { %1806 = vmatprep.mubr.f32.mxu0 %v3669_v1  ;;  %2827 = vmatprep.mubr.msk.f32.mxu1 %vm3670_vm0, %v3669_v1 }
 0x591   : > { %3208 = vmatpush1.bf16.msra.mxu0 %v4185_v12  ;;  %3238 = vmatpush3.bf16.msra.mxu1 %v4189_v17 }
 0x592   : > { %3210 = vmatprep.subr.bf16.mxu0 %v4195_v19  ;;  %3239 = vmatprep.subr.bf16.mxu1 %v3668_v0 }
 0x595   : > { %3212 = vmatpush1.bf16.msra.mxu0 %v4201_v25  ;;  %3241 = vmatpush3.bf16.msra.mxu1 %v4205_v27 }
 0x596   : > { %3214 = vmatprep.subr.bf16.mxu0 %v4211_v31  ;;  %3242 = vmatprep.subr.bf16.mxu1 %v3668_v0 }
 0x599   : > { %3216 = vmatpush1.bf16.msra.mxu0 %v4217_v39  ;;  %3244 = vmatpush3.bf16.msra.mxu1 %v4221_v10 }
 0x59a   : > { %3218 = vmatprep.subr.bf16.mxu0 %v4227_v21  ;;  %3245 = vmatprep.subr.bf16.mxu1 %v3668_v0 }
 0x59d   : > { %3220 = vmatpush1.bf16.msra.mxu0 %v4233_v34  ;;  %3247 = vmatpush3.bf16.msra.mxu1 %v4237_v41 }
 0x59e   : > { %3222 = vmatprep.subr.bf16.mxu0 %v4244_v52  ;;  %3248 = vmatprep.subr.bf16.mxu1 %v3668_v0 }
 0x5a1   : > { %3224 = vmatpush1.bf16.msra.mxu0 %v4250_v62  ;;  %3250 = vmatpush3.bf16.msra.mxu1 %v4252_v4 }
 0x5a2   : > { %3226 = vmatprep.subr.bf16.mxu0 %v4258_v40  ;;  %3251 = vmatprep.subr.bf16.mxu1 %v3668_v0 }
 0x5a5   : > { %3228 = vmatpush1.bf16.msra.mxu0 %v4264_v48  ;;  %3253 = vmatpush3.bf16.msra.mxu1 %v4270_v55 }
 0x5a6   : > { %3230 = vmatprep.subr.bf16.mxu0 %v4272_v57  ;;  %3254 = vmatprep.subr.bf16.mxu1 %v3668_v0 }
 0x5a9   : > { %3232 = vmatpush1.bf16.msra.mxu0 %v4280_v8  ;;  %3256 = vmatpush3.bf16.msra.mxu1 %v4284_v13 }
 0x5aa   : > { %3258 = vmatprep.subr.bf16.mxu0 %v4164_v49  ;;  %3289 = vmatprep.subr.bf16.mxu1 %v3668_v0 }
 0x65f   : > { %v1584_v44 = vpop.f32.mrb[10].mxu0  ;;  %v1655_v50 = vpop.f32.mrb[10].mxu1 }
 0x660   : > { %v1659_v59 = vadd.f32 %v1584_v44, %v1467_v43  ;;  %v1586_v61 = vpop.f32.mrb[11].mxu0  ;;  %v2794_v6 = vpop.f32.mrb[11].mxu1  ;;  %v1673_v60 = vadd.f32 %v4055_v37, %v1655_v50 }
 0x661   : > { %v1666_v14 = vadd.f32 %v1586_v61, %v1468_v53 }
 0x662   : > { %v2423_v11 = vmul.f32 -1.442695, %v1659_v59 }
 0x663   : > { %v2424_v46 = vmul.f32 -1.442695, %v1666_v14 }
 0x664   : > { %3451 = vpow2.f32 %v2423_v11 }
 0x665   : > { %3453 = vpow2.f32 %v2424_v46 }
 0x66e   : > { %v3452_v42 = vpop.eup %3451 }
 0x66f   : > { %v1663_v49 = vadd.f32 1.0, %v3452_v42  ;;  %v3454_v45 = vpop.eup %3453 }
 0x670   : > { %v1670_v51 = vadd.f32 1.0, %v3454_v45 }
 0x671   : > { %3455 = vrcp.f32 %v1663_v49 }
 0x672   : > { %3457 = vrcp.f32 %v1670_v51 }
 0x67b   : > { %v3456_v63 = vpop.eup %3455 }
 0x67c   : > { %v1674_v3 = vmul.f32 %v3456_v63, %v1673_v60  ;;  %v3458_v18 = vpop.eup %3457 }
 0x67d   : > { %v1677_v5 = vsub.f32 1.0, %v3458_v18  ;;  %v1679_v24 = vmul.f32 %v3458_v18, %v4342_v32 }
 0x67e   : > { %v1675_v7 = vadd.f32 %v1674_v3, %v1469_v54 }
 0x680   : > { %3459 = vtanh.f32 %v1675_v7 }
 0x68a   : > { %v3460_v20 = vpop.eup %3459 }
 0x68b   : > { %v1678_v22 = vmul.f32 %v3460_v20, %v1677_v5 }
 0x68d   : > { %v4388_v26 = vadd.f32 %v1679_v24, %v1678_v22 }
 0x68f   : > { %2426 = vst [vmem:[%s2288_s25 + $0x28] sm:$0xff] %v4388_v26  ;;  %1807 = vmatmul.mubr.f32.vlgmr.msra.gmra.mrb[12].mxu0 %v4388_v26  ;;  %2828 = vmatmul.mubr.f32.vlgmr.msra.gmra.mrb[12].mxu1 %v4388_v26  ;;  %s4442_s25 = scalar_lea.hbm %s4525_s3, %s2443_s27 }
 0x690   : > { %3260 = vmatpush1.bf16.msra.mxu0 %v4169_v56  ;;  %3291 = vmatpush3.bf16.msra.mxu1 %v4173_v58 }
 0x691   : > { %3262 = vmatprep.subr.bf16.mxu0 %v4179_v2  ;;  %3292 = vmatprep.subr.bf16.mxu1 %v3668_v0 }
 0x692   : > { %2030 = vmatprep.mubr.f32.mxu0 %v3669_v1  ;;  %2862 = vmatprep.mubr.msk.f32.mxu1 %vm3670_vm0, %v3669_v1  ;;  %v2428_v1 = vld [vmem:[%s2292_s13 + $0x48] sm:$0xff] }
 0x693   : > { %v1691_v37 = vunpack.c.l.bf16 %v2428_v1  ;;  %v1692_v2 = vunpack.c.h.bf16 %v2428_v1 }
 0x694   : > { %3264 = vmatpush1.bf16.msra.mxu0 %v4185_v12  ;;  %3294 = vmatpush3.bf16.msra.mxu1 %v4189_v17 }
 0x695   : > { %3266 = vmatprep.subr.bf16.mxu0 %v4195_v19  ;;  %3295 = vmatprep.subr.bf16.mxu1 %v3668_v0 }
 0x698   : > { %3268 = vmatpush1.bf16.msra.mxu0 %v4201_v25  ;;  %3297 = vmatpush3.bf16.msra.mxu1 %v4205_v27 }
 0x699   : > { %3270 = vmatprep.subr.bf16.mxu0 %v4211_v31  ;;  %3298 = vmatprep.subr.bf16.mxu1 %v3668_v0 }
 0x69c   : > { %3272 = vmatpush1.bf16.msra.mxu0 %v4217_v39  ;;  %3300 = vmatpush3.bf16.msra.mxu1 %v4221_v10 }
 0x69d   : > { %3274 = vmatprep.subr.bf16.mxu0 %v4227_v21  ;;  %3301 = vmatprep.subr.bf16.mxu1 %v3668_v0  ;;  %v2429_v21 = vld [vmem:[%s2292_s13 + $0x50] sm:$0xf] }
 0x6a0   : > { %3276 = vmatpush1.bf16.msra.mxu0 %v4233_v34  ;;  %3303 = vmatpush3.bf16.msra.mxu1 %v4237_v41  ;;  %v1693_v41 = vunpack.c.l.bf16 %v2429_v21 }
 0x6a1   : > { %3278 = vmatprep.subr.bf16.mxu0 %v4244_v52  ;;  %3304 = vmatprep.subr.bf16.mxu1 %v3668_v0  ;;  %v3481_v52 = vld [vmem:[%s4052_s10] ss:$0 sm:$0xff]  ;;  %s2434_s10 = smul.u32 4294967212, %s3652_s18 }
 0x6a3   : > { %s2300_s5 = scalar_lea.vmem %s3861_s24, %s2434_s10 [#allocation3]  ;;  %s2439_s24 = smul.u32 4294967240, %s3652_s18 }
 0x6a4   : > { %3280 = vmatpush1.bf16.msra.mxu0 %v4250_v62  ;;  %3306 = vmatpush3.bf16.msra.mxu1 %v4252_v4  ;;  %v2435_v33 = vld [vmem:[%s2300_s5 + $0x54] sm:$0xff]  ;;  %v2436_v59 = vld [vmem:[%s2300_s5 + $0x5c] sm:$0xf]  ;;  %s2178_s18 = sshll.u32 %s316_s14, 4  ;;  %s3542_s10 = scalar_lea.vmem %s4444_s9, 1024  ;;  %s4451_s18 = int_to_ptr.vmem [resolvable:$true] %s2178_s18 }
 0x6a5   : > { %3282 = vmatprep.subr.bf16.mxu0 %v4258_v40  ;;  %3307 = vmatprep.subr.bf16.mxu1 %v3668_v0  ;;  %v1915_v36 = vunpack.c.l.bf16 %v2435_v33  ;;  %v1916_v15 = vunpack.c.h.bf16 %v2435_v33  ;;  %v1917_v6 = vunpack.c.l.bf16 %v2436_v59  ;;  %s2304_s12 = scalar_lea.vmem %s4060_s21, %s2439_s24 [#allocation8]  ;;  %p3543_p3 = scmp.ne.s32.totalorder %s4444_s9, %s3542_s10 }
 0x6a6   : > { %s3671_s5 = smov [#allocation8]  }
 0x6a7   : > { %p3544_p13 = pnand %p3543_p3, %p4537_p11  ;;  %s3546_s24 = sshll.u32 %s3671_s5, 4  ;;  %s3547_s24 = int_to_ptr.vmem [resolvable:$false] %s3546_s24 }
 0x6a8   : > { %3284 = vmatpush1.bf16.msra.mxu0 %v4264_v48  ;;  %3309 = vmatpush3.bf16.msra.mxu1 %v4270_v55  ;;  %s3548_s8 = scalar_lea.vmem %s3547_s24, 2048  ;;  %p3549_p10 = scmp.lt.s32.totalorder %s4444_s9, %s3547_s24 }
 0x6a9   : > { %3286 = vmatprep.subr.bf16.mxu0 %v4272_v57  ;;  %3310 = vmatprep.subr.bf16.mxu1 %v3668_v0  ;;  %p3545_p7 = pneg %p3544_p13  ;;  %p3550_p12 = scmp.lt.s32.totalorder %s3548_s8, %s3542_s10 }
 0x6ab   : > { %p3551_p9 = por %p3550_p12, %p3549_p10 }
 0x6ac   : > { %3288 = vmatpush1.bf16.msra.mxu0 %v4280_v8  ;;  %3312 = vmatpush3.bf16.msra.mxu1 %v4284_v13 }
 0x6ad   : > { %p3552_p1 = pnand %p3551_p9, %p3545_p7 }
 0x762   : > { %v1808_v56 = vpop.f32.mrb[12].mxu0  ;;  %v1879_v58 = vpop.f32.mrb[12].mxu1 }
 0x763   : > { %v1883_v12 = vadd.f32 %v1808_v56, %v1691_v37  ;;  %v1810_v17 = vpop.f32.mrb[13].mxu0  ;;  %v2829_v19 = vpop.f32.mrb[13].mxu1  ;;  %v1897_v62 = vadd.f32 %v3481_v52, %v1879_v58 }
 0x764   : > { %v1890_v27 = vadd.f32 %v1810_v17, %v1692_v2 }
 0x765   : > { %v2430_v25 = vmul.f32 -1.442695, %v1883_v12 }
 0x766   : > { %v2431_v31 = vmul.f32 -1.442695, %v1890_v27 }
 0x767   : > { %3461 = vpow2.f32 %v2430_v25 }
 0x768   : > { %3463 = vpow2.f32 %v2431_v31 }
 0x771   : > { %v3462_v0 = vpop.eup %3461 }
 0x772   : > { %v1887_v39 = vadd.f32 1.0, %v3462_v0  ;;  %v3464_v10 = vpop.eup %3463 }
 0x773   : > { %v1894_v34 = vadd.f32 1.0, %v3464_v10 }
 0x774   : > { %3465 = vrcp.f32 %v1887_v39 }
 0x775   : > { %3467 = vrcp.f32 %v1894_v34 }
 0x77e   : > { %v3466_v4 = vpop.eup %3465 }
 0x77f   : > { %v1898_v40 = vmul.f32 %v3466_v4, %v1897_v62  ;;  %v3468_v55 = vpop.eup %3467 }
 0x780   : > { %v1901_v57 = vsub.f32 1.0, %v3468_v55  ;;  %v1903_v28 = vmul.f32 %v3468_v55, %v4388_v26 }
 0x781   : > { %v1899_v48 = vadd.f32 %v1898_v40, %v1693_v41 }
 0x783   : > { %3469 = vtanh.f32 %v1899_v48 }
 0x78d   : > { %v3470_v8 = vpop.eup %3469 }
 0x78e   : > { %v1902_v13 = vmul.f32 %v3470_v8, %v1901_v57 }
 0x790   : > { %v1904_v30 = vadd.f32 %v1903_v28, %v1902_v13 }
 0x792   : > { %2433 = vst [vmem:[%s2296_s7 + $0x30] sm:$0xff] %v1904_v30  ;;  %2031 = vmatmul.mubr.f32.vlgmr.msra.gmra.mrb[14].mxu0 %v1904_v30  ;;  %2863 = vmatmul.mubr.f32.vlgmr.msra.gmra.mrb[14].mxu1 %v1904_v30  ;;  %s2138_s7 = scalar_lea.sflag [#allocation5], %s3857_s22 }
 0x865   : > { %v2032_v38 = vpop.f32.mrb[14].mxu0  ;;  %v2103_v9 = vpop.f32.mrb[14].mxu1 }
 0x866   : > { %v2107_v16 = vadd.f32 %v2032_v38, %v1915_v36  ;;  %v2034_v23 = vpop.f32.mrb[15].mxu0  ;;  %v2864_v29 = vpop.f32.mrb[15].mxu1  ;;  %v2121_v11 = vadd.f32 %v3481_v52, %v2103_v9 }
 0x867   : > { %v2114_v35 = vadd.f32 %v2034_v23, %v1916_v15 }
 0x868   : > { %v2437_v32 = vmul.f32 -1.442695, %v2107_v16 }
 0x869   : > { %v2438_v43 = vmul.f32 -1.442695, %v2114_v35 }
 0x86a   : > { %3471 = vpow2.f32 %v2437_v32 }
 0x86b   : > { %3473 = vpow2.f32 %v2438_v43 }
 0x874   : > { %v3472_v44 = vpop.eup %3471 }
 0x875   : > { %v2111_v50 = vadd.f32 1.0, %v3472_v44  ;;  %v3474_v53 = vpop.eup %3473 }
 0x876   : > { %v2118_v61 = vadd.f32 1.0, %v3474_v53 }
 0x877   : > { %3475 = vrcp.f32 %v2111_v50 }
 0x878   : > { %3477 = vrcp.f32 %v2118_v61 }
 0x881   : > { %v3476_v14 = vpop.eup %3475 }
 0x882   : > { %v2122_v46 = vmul.f32 %v3476_v14, %v2121_v11  ;;  %v3478_v49 = vpop.eup %3477 }
 0x883   : > { %v2125_v45 = vsub.f32 1.0, %v3478_v49  ;;  %v2127_v54 = vmul.f32 %v3478_v49, %v1904_v30 }
 0x884   : > { %v2123_v42 = vadd.f32 %v2122_v46, %v1917_v6 }
 0x886   : > { %3479 = vtanh.f32 %v2123_v42 }
 0x890   : > { %v3480_v47 = vpop.eup %3479 }
 0x891   : > { %v2126_v51 = vmul.f32 %v3480_v47, %v2125_v45 }
 0x893   : > { %v2128_v60 = vadd.f32 %v2127_v54, %v2126_v51 }
 0x895   : > { %2440 = vst [vmem:[%s2304_s12 + $0x38] sm:$0xff] %v2128_v60  ;;  %2136 = vst [vmem:[%s316_s14] sm:$0xff] %v2128_v60 }
 0x896   : > { %3555 = shalt.err (!%p3552_p1)
}
 0x897   : > { %s3556_s27 = scalar_lea.hbm %s4442_s25, 1024  ;;  %s3560_s6 = scalar_lea.hbm %s4525_s3, 2048 }
 0x898   : > { %p3557_p5 = scmp.ne.s32.totalorder %s4442_s25, %s3556_s27  ;;  %p3561_p6 = scmp.lt.u32.totalorder %s4442_s25, %s4525_s3 }
 0x899   : > { %p3562_p8 = scmp.lt.u32.totalorder %s3560_s6, %s3556_s27  ;;  %p3564_p3 = scmp.lt.u32.totalorder %s3556_s27, %s4442_s25 }
 0x89a   : > { %p3558_p2 = pnand %p3557_p5, %p4537_p11 }
 0x89b   : > { %p3563_p0 = por %p3562_p8, %p3561_p6 }
 0x89c   : > { %p3559_p4 = pneg %p3558_p2 }
 0x89d   : > { %p3565_p13 = por %p3564_p3, %p3563_p0 }
 0x89f   : > { %p3566_p7 = pnand %p3565_p13, %p3559_p4 }
 0x8a1   : > { %3569 = shalt.err (!%p3566_p7)
}
 0x8a2   : > { %s3672_s21 = smov 128   ;;  %s3673_s10 = smov 256  }
 0x8a3   : > { %s3674_s5 = smov 8   ;;  %s2143_s24 = scalar_lea.sflag [#allocation10], %s3857_s22 }
 0x8a4   : > { %3323 = dma.vmem_to_hbm [thread:$0]  (%p4537_p11), %s4444_s9, 1024, %s4442_s25, %s2138_s7, %s3672_s21, %s3673_s10, %s3674_s5  }
 0x8a5   : > { %s3570_s8 = scalar_lea.vmem %s4451_s18, 128  ;;  %s3675_s27 = smov [#allocation9]  }
 0x8a6   : > { %p3571_p10 = scmp.ne.s32.totalorder %s4451_s18, %s3570_s8  ;;  %s3574_s12 = sshll.u32 %s3675_s27, 4  ;;  %s3575_s12 = int_to_ptr.vmem [resolvable:$false] %s3574_s12 }
 0x8a7   : > { %s3576_s11 = scalar_lea.vmem %s3575_s12, 256  ;;  %p3577_p1 = scmp.lt.s32.totalorder %s4451_s18, %s3575_s12 }
 0x8a8   : > { %p3572_p12 = pnand %p3571_p10, %p4537_p11  ;;  %p3578_p5 = scmp.lt.s32.totalorder %s3576_s11, %s3570_s8 }
 0x8aa   : > { %p3573_p9 = pneg %p3572_p12  ;;  %p3579_p2 = por %p3578_p5, %p3577_p1 }
 0x8ac   : > { %p3580_p4 = pnand %p3579_p2, %p3573_p9 }
 0x8ae   : > { %3583 = shalt.err (!%p3580_p4)
}
 0x8af   : > { %s3584_s22 = scalar_lea.hbm %s4449_s26, 128  ;;  %s3588_s7 = scalar_lea.hbm %s4526_s4, 256 }
 0x8b0   : > { %p3585_p6 = scmp.ne.s32.totalorder %s4449_s26, %s3584_s22  ;;  %p3589_p3 = scmp.lt.u32.totalorder %s4449_s26, %s4526_s4 }
 0x8b1   : > { %p3590_p13 = scmp.lt.u32.totalorder %s3588_s7, %s3584_s22  ;;  %p3592_p10 = scmp.lt.u32.totalorder %s3584_s22, %s4449_s26 }
 0x8b2   : > { %p3586_p8 = pnand %p3585_p6, %p4537_p11 }
 0x8b3   : > { %p3591_p7 = por %p3590_p13, %p3589_p3 }
 0x8b4   : > { %p3587_p0 = pneg %p3586_p8 }
 0x8b5   : > { %p3593_p12 = por %p3592_p10, %p3591_p7 }
 0x8b7   : > { %p3594_p9 = pnand %p3593_p12, %p3587_p0 }
 0x8b9   : > { %3597 = shalt.err (!%p3594_p9)
}
 0x8ba   : > { %3324 = dma.vmem_to_hbm [thread:$0]  (%p4537_p11), %s4451_s18, 128, %s4449_s26, %s2143_s24  }
 0x8bb PF: > { %s2190_s13 = sand.u32 1, %s3640_s15   ;;  %p4538_p1 = scmp.ne.s32.totalorder %s4532_s30, 0 }
 0x8bc   : > { %p4539_p5 = scmp.ge.s32.totalorder %s3660_s20, 2  ;;  %s2191_s21 = scalar_lea.sflag [#allocation5], %s2190_s13 }
 0x8be   : > { %p3335_p2 = pnand %p4539_p5, %p4538_p1 }
 0x8c0   : > { %3631 = dma.done.wait (!%p3335_p2), %s2191_s21, 1024  }
 0x8c1   : > { %3633 = vsyncadd (!%p3335_p2), %s2191_s21, 4294966272  ;;  %s2200_s10 = scalar_lea.sflag [#allocation10], %s2190_s13 }
 0x8c2   : > { %3635 = dma.done.wait (!%p3335_p2), %s2200_s10, 128  }
 0x8c3   : > { %3637 = vsyncadd (!%p3335_p2), %s2200_s10, 4294967168  ;;  %s27_s20 = sadd.s32 1, %s3660_s20   ;;  %s4540_s15 = smov %s3644_s16 }
 0x8c4   : > { %p24_p4 = scmp.ge.s32.totalorder %s27_s20, 4   ;;  %s4541_s16 = smov %s3648_s17 }
 0x8c5   : > { %s4542_s17 = smov %s3757_s29  ;;  %s4543_s18 = smov %s3656_s19 }
 0x8c6   : > { %s4544_s19 = smov %s4546_s23  ;;  %26 = sbr.rel (!%p24_p4) target bundleno = 10 (0xa), region = 134 }
 0x8cd   :  { %2205 = vsyncpa [#allocation4], 1 }
 0x8ce   :  { %2207 = vsyncpa [#allocation4 + $0x1], 1 }
 0x8cf   :  { %2208 = vsyncpa [#allocation7], 1 }
 0x8d0   :  { %2210 = vsyncpa [#allocation7 + $0x1], 1 }
 0x8d1   :  { %2211 = vsyncpa [#allocation5], 1 }
 0x8d2   :  { %2213 = vsyncpa [#allocation5 + $0x1], 1 }
 0x8d3   :  { %2214 = vsyncpa [#allocation10], 1 }
 0x8d4   :  { %2216 = vsyncpa [#allocation10 + $0x1], 1 }

</bundles_post_ra>
